<compile_context>
chip_gen: v7x
topology: tpu7x:2x2x1
jax: 0.10.0
libtpu: 0.0.40
codegen_flags: <defaults>
</compile_context>

<pallas_src>
import numpy as np

import jax
import jax.numpy as jnp
from jax import lax
from jax.experimental import pallas as pl
from jax.experimental.pallas import tpu as pltpu

# ---- small, module-consistent hyperparameters ----
ENVS = 2
ACTION_NUM = 4
DIM_X = 8
DIM_Y = 8
FILTER_SIZE = 8          # filter_size
AE_SIN_SIZE = 16         # ae_sin_size
HIDDEN_UNITS = 32        # hidden_units
EMBED_DIM = 8            # embed_dim
HW = DIM_X * DIM_Y                    # 64
IN_DIM = (DIM_X + 1) * (DIM_Y + 1)    # 81: flattened conv output per row
FEAT_PAD = 128                        # lane-dense padding of conv3 features
HPAD = 128                            # lane-dense padding of MLP hidden dim
OUT_PAD = 128                         # lane-dense padding of kernel output
NEG_SLOPE = 0.3
# non-target network: create_mlp(in_dim + ae_sin_size, num_hidden=3, ...)


def _leaky(x):
    return jnp.where(x >= 0, x, NEG_SLOPE * x)


# ---------------------------------------------------------------------------
# Fused forward kernel: conv1/conv2/conv3 (as precomputed matrices) + 4-layer
# MLP, all rows (envs*action_num) processed in one shot on the MXU.
# ---------------------------------------------------------------------------
def fused_forward_kernel(obs_ref, envsel_ref, actsel_ref,
                         m1o_ref, c1a_ref,
                         m2_ref, b2_ref, m3_ref, b3_ref,
                         mw1_ref, b1a_ref,
                         mw2_ref, mb2_ref, mw3_ref, mb3_ref,
                         mw4_ref, mb4_ref, o_ref):
    def mm(a, b):
        return jnp.dot(a, b, preferred_element_type=jnp.float32)

    # conv1 (2->F, 3x3, pad 1) + LeakyReLU(0.3):
    #   obs channel: computed once per env, broadcast to (env, action) rows
    #   via the tiny 0/1 env-selection matmul.
    #   ae_randn channel (+ conv1 bias): host-prefolded per-action table,
    #   broadcast via the 0/1 action-selection matmul.
    obs_c1 = mm(obs_ref[...], m1o_ref[...])                       # (envs, F*HW)
    h = _leaky(mm(envsel_ref[...], obs_c1)
               + mm(actsel_ref[...], c1a_ref[...]))               # (N, F*HW)
    # conv2 (F->F, 3x3, pad 1) + LeakyReLU(0.3).
    h = _leaky(mm(h, m2_ref[...]) + b2_ref[...])                  # (N, F*HW)
    # conv3 (F->1, 2x2, pad 1) + LeakyReLU(0.3); 81 features padded to 128.
    h = _leaky(mm(h, m3_ref[...]) + b3_ref[...])                  # (N, 128)

    # MLP (non-target: 3x Linear+ReLU, then Linear), all 128-lane padded.
    # Layer 1's ae_sin branch + bias is a host-prefolded per-action table.
    z = jnp.maximum(mm(h, mw1_ref[...])
                    + mm(actsel_ref[...], b1a_ref[...]), 0.0)     # (N, 128)
    z = jnp.maximum(mm(z, mw2_ref[...]) + mb2_ref[...], 0.0)
    z = jnp.maximum(mm(z, mw3_ref[...]) + mb3_ref[...], 0.0)
    o_ref[...] = mm(z, mw4_ref[...]) + mb4_ref[...]               # (N, 128)


# ---------------------------------------------------------------------------
# Host-side parameter transforms (done once at init, not per forward call).
# ---------------------------------------------------------------------------
def _conv_as_matrix(w, H, W, pad):
    """Fold a stride-1 Conv2d into a dense matrix M with flat_out = flat_in @ M.

    flat_in lane order : ci*H*W + xi*W + yi   (PyTorch row-major flatten)
    flat_out lane order: co*Ho*Wo + xo*Wo + yo
    """
    w = np.asarray(w, np.float32)
    cout, cin, kh, kw = w.shape
    Ho = H + 2 * pad - kh + 1
    Wo = W + 2 * pad - kw + 1
    m = np.zeros((cin, H, W, cout, Ho, Wo), np.float32)
    for kx in range(kh):
        for ky in range(kw):
            for xo in range(Ho):
                xi = xo + kx - pad
                if xi < 0 or xi >= H:
                    continue
                for yo in range(Wo):
                    yi = yo + ky - pad
                    if yi < 0 or yi >= W:
                        continue
                    m[:, xi, yi, :, xo, yo] = w[:, :, kx, ky].T
    return m.reshape(cin * H * W, cout * Ho * Wo)


def _pad_mat(w, rows, cols):
    wa = np.asarray(w, np.float32)
    wp = np.zeros((rows, cols), np.float32)
    wp[:wa.shape[0], :wa.shape[1]] = wa
    return jnp.asarray(wp)


def _prepare_kernel_params(p):
    kp = {}
    # conv1: split into obs-channel matrix and prefolded per-action bias.
    m1 = _conv_as_matrix(p['w1'], DIM_X, DIM_Y, 1)                 # (128, 512)
    m1_obs = m1[:HW]                                               # (64, 512)
    m1_ae = m1[HW:]                                                # (64, 512)
    b1row = np.repeat(np.asarray(p['b1'], np.float32), HW)[None, :]
    ae_randn = np.asarray(p['ae_randn'], np.float32)               # (A, 64)
    kp['m1_obs'] = jnp.asarray(m1_obs)
    kp['c1_act'] = jnp.asarray(ae_randn @ m1_ae + b1row)           # (A, 512)

    # conv2.
    kp['m2'] = jnp.asarray(_conv_as_matrix(p['w2'], DIM_X, DIM_Y, 1))
    kp['b2row'] = jnp.asarray(
        np.repeat(np.asarray(p['b2'], np.float32), HW)[None, :])

    # conv3: 81-wide output padded to 128 lanes.
    m3 = _conv_as_matrix(p['w3'], DIM_X, DIM_Y, 1)                 # (512, 81)
    kp['m3'] = _pad_mat(m3, m3.shape[0], FEAT_PAD)                 # (512, 128)
    b3row = np.zeros((1, FEAT_PAD), np.float32)
    b3row[:, :IN_DIM] = np.asarray(p['b3'], np.float32)[0]
    kp['b3row'] = jnp.asarray(b3row)

    # MLP layer 1: conv-feature part padded to (128, 128); ae_sin part + bias
    # prefolded into a per-action bias table, padded to 128 lanes.
    mw1 = np.asarray(p['mw1'], np.float32)                         # (97, 32)
    mw1a = np.zeros((FEAT_PAD, HPAD), np.float32)
    mw1a[:IN_DIM, :HIDDEN_UNITS] = mw1[:IN_DIM]
    kp['mw1a'] = jnp.asarray(mw1a)                                 # (128, 128)
    ae_sin = np.asarray(p['ae_sin'], np.float32)                   # (A, 16)
    bias1 = ae_sin @ mw1[IN_DIM:] + np.asarray(p['mb1'], np.float32)
    kp['bias1_act'] = _pad_mat(bias1, ACTION_NUM, HPAD)            # (A, 128)

    # Remaining MLP layers, zero-padded to lane-dense 128x128.
    kp['mw2p'] = _pad_mat(p['mw2'], HPAD, HPAD)
    kp['mb2p'] = _pad_mat(p['mb2'], 1, HPAD)
    kp['mw3p'] = _pad_mat(p['mw3'], HPAD, HPAD)
    kp['mb3p'] = _pad_mat(p['mb3'], 1, HPAD)
    kp['mw4p'] = _pad_mat(p['mw4'], HPAD, OUT_PAD)
    kp['mb4p'] = _pad_mat(p['mb4'], 1, OUT_PAD)
    return kp


# ---------------------------------------------------------------------------
# Full forward.
# ---------------------------------------------------------------------------
@jax.jit
def ucb_count_one_net_forward(obs, params):
    assert obs.ndim == 3, 'ubc one net'
    envs = obs.shape[0]
    n = envs * ACTION_NUM
    obs_flat = obs.astype(jnp.float32).reshape(envs, HW)

    # 0/1 selection matrices implementing the (env, action) broadcast.
    # Row r = env*ACTION_NUM + action.
    env_sel = jnp.asarray(
        np.repeat(np.eye(envs, dtype=np.float32), ACTION_NUM, axis=0))   # (N, envs)
    act_sel = jnp.asarray(
        np.tile(np.eye(ACTION_NUM, dtype=np.float32), (envs, 1)))        # (N, A)

    args = (obs_flat, env_sel, act_sel,
            params['m1_obs'], params['c1_act'],
            params['m2'], params['b2row'], params['m3'], params['b3row'],
            params['mw1a'], params['bias1_act'],
            params['mw2p'], params['mb2p'], params['mw3p'], params['mb3p'],
            params['mw4p'], params['mb4p'])

    def full_spec(shape):
        return pl.BlockSpec(shape, lambda i, _r=len(shape): (0,) * _r)

    out = pl.pallas_call(
        fused_forward_kernel,
        out_shape=jax.ShapeDtypeStruct((n, OUT_PAD), jnp.float32),
        grid_spec=pltpu.PrefetchScalarGridSpec(
            num_scalar_prefetch=0,
            grid=(1,),
            in_specs=[full_spec(a.shape) for a in args],
            out_specs=full_spec((n, OUT_PAD)),
        ),
        compiler_params=pltpu.CompilerParams(
            dimension_semantics=("arbitrary",)),
    )(*args)
    # Lane-dense kernel output slab; slice real embed columns in the wrapper.
    return out[:, :EMBED_DIM].reshape(envs, ACTION_NUM, EMBED_DIM)


# ---------------------------------------------------------------------------
# Deterministic parameter init (synthetic; PyTorch-like uniform bounds).
# ---------------------------------------------------------------------------
def init_params(key):
    ks = jax.random.split(key, 16)

    def u(k, shape, fan_in):
        bound = 1.0 / (fan_in ** 0.5)
        return jax.random.uniform(k, shape, jnp.float32, -bound, bound)

    p = {}
    p['w1'] = u(ks[0], (FILTER_SIZE, 2, 3, 3), 2 * 9)
    p['b1'] = u(ks[1], (FILTER_SIZE,), 2 * 9)
    p['w2'] = u(ks[2], (FILTER_SIZE, FILTER_SIZE, 3, 3), FILTER_SIZE * 9)
    p['b2'] = u(ks[3], (FILTER_SIZE,), FILTER_SIZE * 9)
    p['w3'] = u(ks[4], (1, FILTER_SIZE, 2, 2), FILTER_SIZE * 4)
    p['b3'] = u(ks[5], (1,), FILTER_SIZE * 4)
    din = IN_DIM + AE_SIN_SIZE
    p['mw1'] = u(ks[6], (din, HIDDEN_UNITS), din)
    p['mb1'] = u(ks[7], (1, HIDDEN_UNITS), din)
    p['mw2'] = u(ks[8], (HIDDEN_UNITS, HIDDEN_UNITS), HIDDEN_UNITS)
    p['mb2'] = u(ks[9], (1, HIDDEN_UNITS), HIDDEN_UNITS)
    p['mw3'] = u(ks[10], (HIDDEN_UNITS, HIDDEN_UNITS), HIDDEN_UNITS)
    p['mb3'] = u(ks[11], (1, HIDDEN_UNITS), HIDDEN_UNITS)
    p['mw4'] = u(ks[12], (HIDDEN_UNITS, EMBED_DIM), HIDDEN_UNITS)
    p['mb4'] = u(ks[13], (1, EMBED_DIM), HIDDEN_UNITS)
    # TODO(synk): target-branch positionalencoding1d/2d embeddings replaced by
    # deterministic random tables (same shapes/usage in the forward pass).
    p['ae_randn'] = jax.random.normal(ks[14], (ACTION_NUM, HW), jnp.float32)
    p['ae_sin'] = jax.random.normal(ks[15], (ACTION_NUM, AE_SIN_SIZE),
                                    jnp.float32)
    # Host-side one-time transforms: conv layers folded into dense matrices,
    # constant-parameter branches folded into per-action bias tables,
    # lane-dense (128-wide) padding of conv3 features and the whole MLP.
    p.update(_prepare_kernel_params(p))
    return p


# ---------------------------------------------------------------------------
# Pure-JAX reference (for self-check only) — uses the raw conv/MLP weights.
# ---------------------------------------------------------------------------
def reference_forward(obs, params):
    envs = obs.shape[0]
    A, H, W = ACTION_NUM, DIM_X, DIM_Y
    obs = obs.astype(jnp.float32)
    obs_b = jnp.broadcast_to(obs[:, None, :, :], (envs, A, H, W))
    ae_randn = params['ae_randn'].reshape(A, H, W)
    ae_b = jnp.broadcast_to(ae_randn[None], (envs, A, H, W))
    x = jnp.stack([obs_b, ae_b], axis=2).reshape(envs * A, 2, H, W)

    def conv(x, w, b, pad):
        y = lax.conv_general_dilated(
            x, w, (1, 1), ((pad, pad), (pad, pad)),
            dimension_numbers=('NCHW', 'OIHW', 'NCHW'))
        return _leaky(y + b[None, :, None, None])

    y = conv(x, params['w1'], params['b1'], 1)
    y = conv(y, params['w2'], params['b2'], 1)
    y = conv(y, params['w3'], params['b3'], 1)
    y = y.reshape(envs, A, -1)
    ae_sin = jnp.broadcast_to(params['ae_sin'][None], (envs, A, AE_SIN_SIZE))
    h = jnp.concatenate([y, ae_sin], axis=2)
    h = jnp.maximum(h @ params['mw1'] + params['mb1'][0], 0)
    h = jnp.maximum(h @ params['mw2'] + params['mb2'][0], 0)
    h = jnp.maximum(h @ params['mw3'] + params['mb3'][0], 0)
    return h @ params['mw4'] + params['mb4'][0]


if __name__ == "__main__":
    key = jax.random.PRNGKey(0)
    pkey, okey = jax.random.split(key)
    params = init_params(pkey)
    obs = jax.random.normal(okey, (ENVS, DIM_X, DIM_Y), jnp.float32)

    out = ucb_count_one_net_forward(obs, params)
    out = jax.block_until_ready(out)

    assert out.shape == (ENVS, ACTION_NUM, EMBED_DIM)
    ref = reference_forward(obs, params)
    err = float(jnp.max(jnp.abs(out - ref)))
    assert jnp.allclose(out, ref, rtol=2e-3, atol=2e-3), err
    print("KERNEL_OK")
</pallas_src>

<mosaic_0001>
module attributes {stable_mosaic.version = 11 : i64} {
  func.func @fused_forward_kernel(%arg0: i32, %arg1: memref<2x64xf32, #tpu.memory_space<vmem>>, %arg2: memref<8x2xf32, #tpu.memory_space<vmem>>, %arg3: memref<8x4xf32, #tpu.memory_space<vmem>>, %arg4: memref<64x512xf32, #tpu.memory_space<vmem>>, %arg5: memref<4x512xf32, #tpu.memory_space<vmem>>, %arg6: memref<512x512xf32, #tpu.memory_space<vmem>>, %arg7: memref<1x512xf32, #tpu.memory_space<vmem>>, %arg8: memref<512x128xf32, #tpu.memory_space<vmem>>, %arg9: memref<1x128xf32, #tpu.memory_space<vmem>>, %arg10: memref<128x128xf32, #tpu.memory_space<vmem>>, %arg11: memref<4x128xf32, #tpu.memory_space<vmem>>, %arg12: memref<128x128xf32, #tpu.memory_space<vmem>>, %arg13: memref<1x128xf32, #tpu.memory_space<vmem>>, %arg14: memref<128x128xf32, #tpu.memory_space<vmem>>, %arg15: memref<1x128xf32, #tpu.memory_space<vmem>>, %arg16: memref<128x128xf32, #tpu.memory_space<vmem>>, %arg17: memref<1x128xf32, #tpu.memory_space<vmem>>, %arg18: memref<8x128xf32, #tpu.memory_space<vmem>>) attributes {dimension_semantics = [#tpu.dimension_semantics<arbitrary>], iteration_bounds = array<i64: 1>, scalar_prefetch = 0 : i64, scratch_operands = 0 : i64, tpu.core_type = #tpu.core_type<tc>, window_params = [{pipeline_mode = #tpu.pipeline_mode<synchronous>, transform_indices = @transform_0, window_bounds = array<i64: 2, 64>}, {pipeline_mode = #tpu.pipeline_mode<synchronous>, transform_indices = @transform_1, window_bounds = array<i64: 8, 2>}, {pipeline_mode = #tpu.pipeline_mode<synchronous>, transform_indices = @transform_2, window_bounds = array<i64: 8, 4>}, {pipeline_mode = #tpu.pipeline_mode<synchronous>, transform_indices = @transform_3, window_bounds = array<i64: 64, 512>}, {pipeline_mode = #tpu.pipeline_mode<synchronous>, transform_indices = @transform_4, window_bounds = array<i64: 4, 512>}, {pipeline_mode = #tpu.pipeline_mode<synchronous>, transform_indices = @transform_5, window_bounds = array<i64: 512, 512>}, {pipeline_mode = #tpu.pipeline_mode<synchronous>, transform_indices = @transform_6, window_bounds = array<i64: 1, 512>}, {pipeline_mode = #tpu.pipeline_mode<synchronous>, transform_indices = @transform_7, window_bounds = array<i64: 512, 128>}, {pipeline_mode = #tpu.pipeline_mode<synchronous>, transform_indices = @transform_8, window_bounds = array<i64: 1, 128>}, {pipeline_mode = #tpu.pipeline_mode<synchronous>, transform_indices = @transform_9, window_bounds = array<i64: 128, 128>}, {pipeline_mode = #tpu.pipeline_mode<synchronous>, transform_indices = @transform_10, window_bounds = array<i64: 4, 128>}, {pipeline_mode = #tpu.pipeline_mode<synchronous>, transform_indices = @transform_11, window_bounds = array<i64: 128, 128>}, {pipeline_mode = #tpu.pipeline_mode<synchronous>, transform_indices = @transform_12, window_bounds = array<i64: 1, 128>}, {pipeline_mode = #tpu.pipeline_mode<synchronous>, transform_indices = @transform_13, window_bounds = array<i64: 128, 128>}, {pipeline_mode = #tpu.pipeline_mode<synchronous>, transform_indices = @transform_14, window_bounds = array<i64: 1, 128>}, {pipeline_mode = #tpu.pipeline_mode<synchronous>, transform_indices = @transform_15, window_bounds = array<i64: 128, 128>}, {pipeline_mode = #tpu.pipeline_mode<synchronous>, transform_indices = @transform_16, window_bounds = array<i64: 1, 128>}, {pipeline_mode = #tpu.pipeline_mode<synchronous>, transform_indices = @transform_17, window_bounds = array<i64: 8, 128>}]} {
    %c0 = arith.constant 0 : index
    %c0_0 = arith.constant 0 : index
    %0 = vector.load %arg1[%c0, %c0_0] : memref<2x64xf32, #tpu.memory_space<vmem>>, vector<2x64xf32>
    %c0_1 = arith.constant 0 : index
    %c0_2 = arith.constant 0 : index
    %1 = vector.load %arg4[%c0_1, %c0_2] : memref<64x512xf32, #tpu.memory_space<vmem>>, vector<64x512xf32>
    %cst = arith.constant dense<0.000000e+00> : vector<2x512xf32>
    %2 = tpu.matmul %0, %1, %cst {dimension_numbers = #tpu.dot_dimension_numbers<[1], [0], [0], [1], [0, 0, 1, 1], [], []>} : vector<2x64xf32>, vector<64x512xf32>, vector<2x512xf32> -> vector<2x512xf32>
    %c0_3 = arith.constant 0 : index
    %c0_4 = arith.constant 0 : index
    %3 = vector.load %arg2[%c0_3, %c0_4] : memref<8x2xf32, #tpu.memory_space<vmem>>, vector<8x2xf32>
    %cst_5 = arith.constant dense<0.000000e+00> : vector<8x512xf32>
    %4 = tpu.matmul %3, %2, %cst_5 {dimension_numbers = #tpu.dot_dimension_numbers<[1], [0], [0], [1], [0, 0, 1, 1], [], []>} : vector<8x2xf32>, vector<2x512xf32>, vector<8x512xf32> -> vector<8x512xf32>
    %c0_6 = arith.constant 0 : index
    %c0_7 = arith.constant 0 : index
    %5 = vector.load %arg3[%c0_6, %c0_7] : memref<8x4xf32, #tpu.memory_space<vmem>>, vector<8x4xf32>
    %c0_8 = arith.constant 0 : index
    %c0_9 = arith.constant 0 : index
    %6 = vector.load %arg5[%c0_8, %c0_9] : memref<4x512xf32, #tpu.memory_space<vmem>>, vector<4x512xf32>
    %cst_10 = arith.constant dense<0.000000e+00> : vector<8x512xf32>
    %7 = tpu.matmul %5, %6, %cst_10 {dimension_numbers = #tpu.dot_dimension_numbers<[1], [0], [0], [1], [0, 0, 1, 1], [], []>} : vector<8x4xf32>, vector<4x512xf32>, vector<8x512xf32> -> vector<8x512xf32>
    %8 = arith.addf %4, %7 : vector<8x512xf32>
    %cst_11 = arith.constant 0.000000e+00 : f32
    %9 = vector.broadcast %cst_11 : f32 to vector<8x512xf32>
    %10 = arith.cmpf oge, %8, %9 : vector<8x512xf32>
    %cst_12 = arith.constant 3.000000e-01 : f32
    %11 = vector.broadcast %cst_12 : f32 to vector<8x512xf32>
    %12 = arith.mulf %11, %8 : vector<8x512xf32>
    %13 = arith.select %10, %8, %12 : vector<8x512xi1>, vector<8x512xf32>
    %c0_13 = arith.constant 0 : index
    %c0_14 = arith.constant 0 : index
    %14 = vector.load %arg6[%c0_13, %c0_14] : memref<512x512xf32, #tpu.memory_space<vmem>>, vector<512x512xf32>
    %cst_15 = arith.constant dense<0.000000e+00> : vector<8x512xf32>
    %15 = tpu.matmul %13, %14, %cst_15 {dimension_numbers = #tpu.dot_dimension_numbers<[1], [0], [0], [1], [0, 0, 1, 1], [], []>} : vector<8x512xf32>, vector<512x512xf32>, vector<8x512xf32> -> vector<8x512xf32>
    %c0_16 = arith.constant 0 : index
    %c0_17 = arith.constant 0 : index
    %16 = vector.load %arg7[%c0_16, %c0_17] : memref<1x512xf32, #tpu.memory_space<vmem>>, vector<1x512xf32>
    %17 = vector.broadcast %16 : vector<1x512xf32> to vector<8x512xf32>
    %18 = arith.addf %15, %17 : vector<8x512xf32>
    %cst_18 = arith.constant 0.000000e+00 : f32
    %19 = vector.broadcast %cst_18 : f32 to vector<8x512xf32>
    %20 = arith.cmpf oge, %18, %19 : vector<8x512xf32>
    %cst_19 = arith.constant 3.000000e-01 : f32
    %21 = vector.broadcast %cst_19 : f32 to vector<8x512xf32>
    %22 = arith.mulf %21, %18 : vector<8x512xf32>
    %23 = arith.select %20, %18, %22 : vector<8x512xi1>, vector<8x512xf32>
    %c0_20 = arith.constant 0 : index
    %c0_21 = arith.constant 0 : index
    %24 = vector.load %arg8[%c0_20, %c0_21] : memref<512x128xf32, #tpu.memory_space<vmem>>, vector<512x128xf32>
    %cst_22 = arith.constant dense<0.000000e+00> : vector<8x128xf32>
    %25 = tpu.matmul %23, %24, %cst_22 {dimension_numbers = #tpu.dot_dimension_numbers<[1], [0], [0], [1], [0, 0, 1, 1], [], []>} : vector<8x512xf32>, vector<512x128xf32>, vector<8x128xf32> -> vector<8x128xf32>
    %c0_23 = arith.constant 0 : index
    %c0_24 = arith.constant 0 : index
    %26 = vector.load %arg9[%c0_23, %c0_24] : memref<1x128xf32, #tpu.memory_space<vmem>>, vector<1x128xf32>
    %27 = vector.broadcast %26 : vector<1x128xf32> to vector<8x128xf32>
    %28 = arith.addf %25, %27 : vector<8x128xf32>
    %cst_25 = arith.constant 0.000000e+00 : f32
    %29 = vector.broadcast %cst_25 : f32 to vector<8x128xf32>
    %30 = arith.cmpf oge, %28, %29 : vector<8x128xf32>
    %cst_26 = arith.constant 3.000000e-01 : f32
    %31 = vector.broadcast %cst_26 : f32 to vector<8x128xf32>
    %32 = arith.mulf %31, %28 : vector<8x128xf32>
    %33 = arith.select %30, %28, %32 : vector<8x128xi1>, vector<8x128xf32>
    %c0_27 = arith.constant 0 : index
    %c0_28 = arith.constant 0 : index
    %34 = vector.load %arg10[%c0_27, %c0_28] : memref<128x128xf32, #tpu.memory_space<vmem>>, vector<128x128xf32>
    %cst_29 = arith.constant dense<0.000000e+00> : vector<8x128xf32>
    %35 = tpu.matmul %33, %34, %cst_29 {dimension_numbers = #tpu.dot_dimension_numbers<[1], [0], [0], [1], [0, 0, 1, 1], [], []>} : vector<8x128xf32>, vector<128x128xf32>, vector<8x128xf32> -> vector<8x128xf32>
    %c0_30 = arith.constant 0 : index
    %c0_31 = arith.constant 0 : index
    %36 = vector.load %arg3[%c0_30, %c0_31] : memref<8x4xf32, #tpu.memory_space<vmem>>, vector<8x4xf32>
    %c0_32 = arith.constant 0 : index
    %c0_33 = arith.constant 0 : index
    %37 = vector.load %arg11[%c0_32, %c0_33] : memref<4x128xf32, #tpu.memory_space<vmem>>, vector<4x128xf32>
    %cst_34 = arith.constant dense<0.000000e+00> : vector<8x128xf32>
    %38 = tpu.matmul %36, %37, %cst_34 {dimension_numbers = #tpu.dot_dimension_numbers<[1], [0], [0], [1], [0, 0, 1, 1], [], []>} : vector<8x4xf32>, vector<4x128xf32>, vector<8x128xf32> -> vector<8x128xf32>
    %39 = arith.addf %35, %38 : vector<8x128xf32>
    %cst_35 = arith.constant 0.000000e+00 : f32
    %40 = vector.broadcast %cst_35 : f32 to vector<8x128xf32>
    %41 = arith.maximumf %39, %40 : vector<8x128xf32>
    %c0_36 = arith.constant 0 : index
    %c0_37 = arith.constant 0 : index
    %42 = vector.load %arg12[%c0_36, %c0_37] : memref<128x128xf32, #tpu.memory_space<vmem>>, vector<128x128xf32>
    %cst_38 = arith.constant dense<0.000000e+00> : vector<8x128xf32>
    %43 = tpu.matmul %41, %42, %cst_38 {dimension_numbers = #tpu.dot_dimension_numbers<[1], [0], [0], [1], [0, 0, 1, 1], [], []>} : vector<8x128xf32>, vector<128x128xf32>, vector<8x128xf32> -> vector<8x128xf32>
    %c0_39 = arith.constant 0 : index
    %c0_40 = arith.constant 0 : index
    %44 = vector.load %arg13[%c0_39, %c0_40] : memref<1x128xf32, #tpu.memory_space<vmem>>, vector<1x128xf32>
    %45 = vector.broadcast %44 : vector<1x128xf32> to vector<8x128xf32>
    %46 = arith.addf %43, %45 : vector<8x128xf32>
    %cst_41 = arith.constant 0.000000e+00 : f32
    %47 = vector.broadcast %cst_41 : f32 to vector<8x128xf32>
    %48 = arith.maximumf %46, %47 : vector<8x128xf32>
    %c0_42 = arith.constant 0 : index
    %c0_43 = arith.constant 0 : index
    %49 = vector.load %arg14[%c0_42, %c0_43] : memref<128x128xf32, #tpu.memory_space<vmem>>, vector<128x128xf32>
    %cst_44 = arith.constant dense<0.000000e+00> : vector<8x128xf32>
    %50 = tpu.matmul %48, %49, %cst_44 {dimension_numbers = #tpu.dot_dimension_numbers<[1], [0], [0], [1], [0, 0, 1, 1], [], []>} : vector<8x128xf32>, vector<128x128xf32>, vector<8x128xf32> -> vector<8x128xf32>
    %c0_45 = arith.constant 0 : index
    %c0_46 = arith.constant 0 : index
    %51 = vector.load %arg15[%c0_45, %c0_46] : memref<1x128xf32, #tpu.memory_space<vmem>>, vector<1x128xf32>
    %52 = vector.broadcast %51 : vector<1x128xf32> to vector<8x128xf32>
    %53 = arith.addf %50, %52 : vector<8x128xf32>
    %cst_47 = arith.constant 0.000000e+00 : f32
    %54 = vector.broadcast %cst_47 : f32 to vector<8x128xf32>
    %55 = arith.maximumf %53, %54 : vector<8x128xf32>
    %c0_48 = arith.constant 0 : index
    %c0_49 = arith.constant 0 : index
    %56 = vector.load %arg16[%c0_48, %c0_49] : memref<128x128xf32, #tpu.memory_space<vmem>>, vector<128x128xf32>
    %cst_50 = arith.constant dense<0.000000e+00> : vector<8x128xf32>
    %57 = tpu.matmul %55, %56, %cst_50 {dimension_numbers = #tpu.dot_dimension_numbers<[1], [0], [0], [1], [0, 0, 1, 1], [], []>} : vector<8x128xf32>, vector<128x128xf32>, vector<8x128xf32> -> vector<8x128xf32>
    %c0_51 = arith.constant 0 : index
    %c0_52 = arith.constant 0 : index
    %58 = vector.load %arg17[%c0_51, %c0_52] : memref<1x128xf32, #tpu.memory_space<vmem>>, vector<1x128xf32>
    %59 = vector.broadcast %58 : vector<1x128xf32> to vector<8x128xf32>
    %60 = arith.addf %57, %59 : vector<8x128xf32>
    %c0_53 = arith.constant 0 : index
    %c0_54 = arith.constant 0 : index
    %61 = vector.load %arg18[%c0_53, %c0_54] : memref<8x128xf32, #tpu.memory_space<vmem>>, vector<8x128xf32>
    tpu.vector_store %arg18[%c0_53, %c0_54], %60 {strides = array<i32>} : memref<8x128xf32, #tpu.memory_space<vmem>>, vector<8x128xf32>,
    return
  }
  func.func @transform_0(%arg0: i32) -> (i32, i32) {
    %c0_i32 = arith.constant 0 : i32
    %c0_i32_0 = arith.constant 0 : i32
    %c0_i32_1 = arith.constant 0 : i32
    return %c0_i32, %c0_i32_0 : i32, i32
  }
  func.func @transform_1(%arg0: i32) -> (i32, i32) {
    %c0_i32 = arith.constant 0 : i32
    %c0_i32_0 = arith.constant 0 : i32
    %c0_i32_1 = arith.constant 0 : i32
    return %c0_i32, %c0_i32_0 : i32, i32
  }
  func.func @transform_2(%arg0: i32) -> (i32, i32) {
    %c0_i32 = arith.constant 0 : i32
    %c0_i32_0 = arith.constant 0 : i32
    %c0_i32_1 = arith.constant 0 : i32
    return %c0_i32, %c0_i32_0 : i32, i32
  }
  func.func @transform_3(%arg0: i32) -> (i32, i32) {
    %c0_i32 = arith.constant 0 : i32
    %c0_i32_0 = arith.constant 0 : i32
    %c0_i32_1 = arith.constant 0 : i32
    return %c0_i32, %c0_i32_0 : i32, i32
  }
  func.func @transform_4(%arg0: i32) -> (i32, i32) {
    %c0_i32 = arith.constant 0 : i32
    %c0_i32_0 = arith.constant 0 : i32
    %c0_i32_1 = arith.constant 0 : i32
    return %c0_i32, %c0_i32_0 : i32, i32
  }
  func.func @transform_5(%arg0: i32) -> (i32, i32) {
    %c0_i32 = arith.constant 0 : i32
    %c0_i32_0 = arith.constant 0 : i32
    %c0_i32_1 = arith.constant 0 : i32
    return %c0_i32, %c0_i32_0 : i32, i32
  }
  func.func @transform_6(%arg0: i32) -> (i32, i32) {
    %c0_i32 = arith.constant 0 : i32
    %c0_i32_0 = arith.constant 0 : i32
    %c0_i32_1 = arith.constant 0 : i32
    return %c0_i32, %c0_i32_0 : i32, i32
  }
  func.func @transform_7(%arg0: i32) -> (i32, i32) {
    %c0_i32 = arith.constant 0 : i32
    %c0_i32_0 = arith.constant 0 : i32
    %c0_i32_1 = arith.constant 0 : i32
    return %c0_i32, %c0_i32_0 : i32, i32
  }
  func.func @transform_8(%arg0: i32) -> (i32, i32) {
    %c0_i32 = arith.constant 0 : i32
    %c0_i32_0 = arith.constant 0 : i32
    %c0_i32_1 = arith.constant 0 : i32
    return %c0_i32, %c0_i32_0 : i32, i32
  }
  func.func @transform_9(%arg0: i32) -> (i32, i32) {
    %c0_i32 = arith.constant 0 : i32
    %c0_i32_0 = arith.constant 0 : i32
    %c0_i32_1 = arith.constant 0 : i32
    return %c0_i32, %c0_i32_0 : i32, i32
  }
  func.func @transform_10(%arg0: i32) -> (i32, i32) {
    %c0_i32 = arith.constant 0 : i32
    %c0_i32_0 = arith.constant 0 : i32
    %c0_i32_1 = arith.constant 0 : i32
    return %c0_i32, %c0_i32_0 : i32, i32
  }
  func.func @transform_11(%arg0: i32) -> (i32, i32) {
    %c0_i32 = arith.constant 0 : i32
    %c0_i32_0 = arith.constant 0 : i32
    %c0_i32_1 = arith.constant 0 : i32
    return %c0_i32, %c0_i32_0 : i32, i32
  }
  func.func @transform_12(%arg0: i32) -> (i32, i32) {
    %c0_i32 = arith.constant 0 : i32
    %c0_i32_0 = arith.constant 0 : i32
    %c0_i32_1 = arith.constant 0 : i32
    return %c0_i32, %c0_i32_0 : i32, i32
  }
  func.func @transform_13(%arg0: i32) -> (i32, i32) {
    %c0_i32 = arith.constant 0 : i32
    %c0_i32_0 = arith.constant 0 : i32
    %c0_i32_1 = arith.constant 0 : i32
    return %c0_i32, %c0_i32_0 : i32, i32
  }
  func.func @transform_14(%arg0: i32) -> (i32, i32) {
    %c0_i32 = arith.constant 0 : i32
    %c0_i32_0 = arith.constant 0 : i32
    %c0_i32_1 = arith.constant 0 : i32
    return %c0_i32, %c0_i32_0 : i32, i32
  }
  func.func @transform_15(%arg0: i32) -> (i32, i32) {
    %c0_i32 = arith.constant 0 : i32
    %c0_i32_0 = arith.constant 0 : i32
    %c0_i32_1 = arith.constant 0 : i32
    return %c0_i32, %c0_i32_0 : i32, i32
  }
  func.func @transform_16(%arg0: i32) -> (i32, i32) {
    %c0_i32 = arith.constant 0 : i32
    %c0_i32_0 = arith.constant 0 : i32
    %c0_i32_1 = arith.constant 0 : i32
    return %c0_i32, %c0_i32_0 : i32, i32
  }
  func.func @transform_17(%arg0: i32) -> (i32, i32) {
    %c0_i32 = arith.constant 0 : i32
    %c0_i32_0 = arith.constant 0 : i32
    %c0_i32_1 = arith.constant 0 : i32
    return %c0_i32, %c0_i32_0 : i32, i32
  }
}

</mosaic_0001>

<bundles_post_ra>
// kernel: ucb_count_one_net_forward.1
= control target key start
LH: loop header
LB: loop body
LE: loop exit
PB: predicated region body
PF: predicated region fallthrough
CT: control target
= control target key end

     0   :  { %s3324_s0 = inlined_call_operand.vmem [shape: f32[2,64], index: 0, kind: input, shape index: {}]   ;;  %s3325_s1 = inlined_call_operand.vmem [shape: f32[8,2], index: 1, kind: input, shape index: {}]   ;;  %s3326_s2 = inlined_call_operand.vmem [shape: f32[8,4], index: 2, kind: input, shape index: {}]   ;;  %s3327_s3 = inlined_call_operand.hbm [shape: f32[64,512], index: 3, kind: input, shape index: {}]   ;;  %s3328_s4 = inlined_call_operand.vmem [shape: f32[4,512], index: 4, kind: input, shape index: {}]   ;;  %s3329_s5 = inlined_call_operand.hbm [shape: f32[512,512], index: 5, kind: input, shape index: {}]   ;;  %s3330_s6 = inlined_call_operand.hbm [shape: f32[1,512], index: 6, kind: input, shape index: {}]   ;;  %s3331_s7 = inlined_call_operand.hbm [shape: f32[512,128], index: 7, kind: input, shape index: {}]   ;;  %s3332_s8 = inlined_call_operand.vmem [shape: f32[1,128], index: 8, kind: input, shape index: {}]   ;;  %s3333_s9 = inlined_call_operand.hbm [shape: f32[128,128], index: 9, kind: input, shape index: {}]   ;;  %s3334_s10 = inlined_call_operand.hbm [shape: f32[4,128], index: 10, kind: input, shape index: {}]   ;;  %s3335_s11 = inlined_call_operand.hbm [shape: f32[128,128], index: 11, kind: input, shape index: {}]   ;;  %s3336_s12 = inlined_call_operand.vmem [shape: f32[1,128], index: 12, kind: input, shape index: {}]   ;;  %s3337_s13 = inlined_call_operand.hbm [shape: f32[128,128], index: 13, kind: input, shape index: {}]   ;;  %s3338_s14 = inlined_call_operand.vmem [shape: f32[1,128], index: 14, kind: input, shape index: {}]   ;;  %s3339_s15 = inlined_call_operand.hbm [shape: f32[128,128], index: 15, kind: input, shape index: {}]   ;;  %s3340_s16 = inlined_call_operand.vmem [shape: f32[1,128], index: 16, kind: input, shape index: {}]   ;;  %s3341_s17 = inlined_call_operand.hbm [shape: f32[8,128], index: 17, kind: output, shape index: {}]  }
   0x1   :  { %3344 = sst [smem:[#allocation24_spill]] %s3324_s0 }
   0x2   :  { %3345 = sst [smem:[#allocation25_spill]] %s3325_s1 }
   0x3   :  { %22 = vsyncpa [#allocation3], 0 }
   0x4   :  { %23 = vsyncpa [#allocation6], 0 }
   0x5   :  { %24 = vsyncpa [#allocation9], 0 }
   0x6   :  { %25 = vsyncpa [#allocation12], 0 }
   0x7   :  { %26 = vsyncpa [#allocation15], 0 }
   0x8   :  { %27 = vsyncpa [#allocation4], 0  ;;  %s2957_s24 = smov [#allocation5]   ;;  %s2958_s26 = smov [#allocation8]  }
   0x9   :  { %s53_s25 = sshll.u32 %s2957_s24, 4  ;;  %s75_s27 = sshll.u32 %s2958_s26, 4  ;;  %s54_s25 = int_to_ptr.vmem [resolvable:$true] %s53_s25  ;;  %s3064_s27 = int_to_ptr.vmem [resolvable:$true] %s75_s27 }
   0xa   :  { %s2725_s0 = scalar_lea.hbm %s3329_s5, 32768 }
   0xb   :  { %p2726_p0 = scmp.ne.s32.totalorder %s3329_s5, %s2725_s0  ;;  %p2729_p1 = scmp.lt.u32.totalorder %s2725_s0, %s3329_s5 }
   0xd   :  { %p2731_p2 = pnand %p2729_p1, %p2726_p0 }
   0xf   :  { %2734 = shalt.err (!%p2731_p2)
}
  0x10   :  { %s2735_s20 = scalar_lea.vmem %s54_s25, 32768  ;;  %p2740_p4 = scmp.lt.s32.totalorder %s54_s25, %s54_s25 }
  0x11   :  { %p2736_p3 = scmp.ne.s32.totalorder %s54_s25, %s2735_s20  ;;  %p2741_p5 = scmp.lt.s32.totalorder %s2735_s20, %s2735_s20 }
  0x13   :  { %p2742_p6 = por %p2741_p5, %p2740_p4 }
  0x15   :  { %p2743_p7 = pnand %p2742_p6, %p2736_p3 }
  0x17   :  { %2746 = shalt.err (!%p2743_p7)
}
  0x18   :  { %s3342_s21 = smov 512   ;;  %s3343_s22 = smov 32  }
  0x19   :  { %59 = dma.hbm_to_vmem [thread:$0]  %s3329_s5, 32768, %s54_s25, [#allocation6], %s3342_s21, %s3342_s21, %s3343_s22  }
  0x1a   :  { %s2747_s29 = scalar_lea.hbm %s3331_s7, 8192 }
  0x1b   :  { %p2748_p8 = scmp.ne.s32.totalorder %s3331_s7, %s2747_s29  ;;  %p2751_p9 = scmp.lt.u32.totalorder %s2747_s29, %s3331_s7 }
  0x1d   :  { %p2753_p10 = pnand %p2751_p9, %p2748_p8 }
  0x1f   :  { %2756 = shalt.err (!%p2753_p10)
}
  0x20   :  { %s2757_s1 = scalar_lea.vmem %s3064_s27, 8192  ;;  %p2762_p12 = scmp.lt.s32.totalorder %s3064_s27, %s3064_s27 }
  0x21   :  { %p2758_p11 = scmp.ne.s32.totalorder %s3064_s27, %s2757_s1  ;;  %p2763_p13 = scmp.lt.s32.totalorder %s2757_s1, %s2757_s1 }
  0x23   :  { %p2764_p0 = por %p2763_p13, %p2762_p12 }
  0x25   :  { %p2765_p1 = pnand %p2764_p0, %p2758_p11 }
  0x27   :  { %2768 = shalt.err (!%p2765_p1)
}
  0x28   :  { %s2961_s5 = smov 128   ;;  %s2962_s25 = smov 8  }
  0x29   :  { %81 = dma.hbm_to_vmem [thread:$0]  %s3331_s7, 8192, %s3064_s27, [#allocation9], %s2961_s5, %s2961_s5, %s2962_s25  }
  0x2a   :  { %s2963_s24 = smov [#allocation11]   ;;  %s2964_s28 = smov [#allocation14]  }
  0x2b   :  { %s102_s26 = sshll.u32 %s2963_s24, 4  ;;  %s125_s29 = sshll.u32 %s2964_s28, 4  ;;  %s103_s26 = int_to_ptr.vmem [resolvable:$true] %s102_s26  ;;  %s3101_s29 = int_to_ptr.vmem [resolvable:$true] %s125_s29 }
  0x2c   :  { %s2769_s18 = scalar_lea.hbm %s3334_s10, 64 }
  0x2d   :  { %p2770_p2 = scmp.ne.s32.totalorder %s3334_s10, %s2769_s18  ;;  %p2773_p3 = scmp.lt.u32.totalorder %s2769_s18, %s3334_s10 }
  0x2f   :  { %p2775_p4 = pnand %p2773_p3, %p2770_p2 }
  0x31   :  { %2778 = shalt.err (!%p2775_p4)
}
  0x32   :  { %s2779_s7 = scalar_lea.vmem %s103_s26, 64  ;;  %p2784_p6 = scmp.lt.s32.totalorder %s103_s26, %s103_s26 }
  0x33   :  { %p2780_p5 = scmp.ne.s32.totalorder %s103_s26, %s2779_s7  ;;  %p2785_p7 = scmp.lt.s32.totalorder %s2779_s7, %s2779_s7 }
  0x35   :  { %p2786_p8 = por %p2785_p7, %p2784_p6 }
  0x37   :  { %p2787_p9 = pnand %p2786_p8, %p2780_p5 }
  0x39   :  { %2790 = shalt.err (!%p2787_p9)
}
  0x3a   :  { %105 = dma.hbm_to_vmem [thread:$0]  %s3334_s10, 64, %s103_s26, [#allocation12]  }
  0x3b   :  { %s2791_s28 = scalar_lea.hbm %s3337_s13, 2048 }
  0x3c   :  { %p2792_p10 = scmp.ne.s32.totalorder %s3337_s13, %s2791_s28  ;;  %p2795_p11 = scmp.lt.u32.totalorder %s2791_s28, %s3337_s13 }
  0x3e   :  { %p2797_p12 = pnand %p2795_p11, %p2792_p10 }
  0x40   :  { %2800 = shalt.err (!%p2797_p12)
}
  0x41   :  { %s2801_s18 = scalar_lea.vmem %s3101_s29, 2048  ;;  %p2806_p0 = scmp.lt.s32.totalorder %s3101_s29, %s3101_s29 }
  0x42   :  { %p2802_p13 = scmp.ne.s32.totalorder %s3101_s29, %s2801_s18  ;;  %p2807_p1 = scmp.lt.s32.totalorder %s2801_s18, %s2801_s18 }
  0x44   :  { %p2808_p2 = por %p2807_p1, %p2806_p0 }
  0x46   :  { %p2809_p3 = pnand %p2808_p2, %p2802_p13 }
  0x48   :  { %2812 = shalt.err (!%p2809_p3)
}
  0x49   :  { %131 = dma.hbm_to_vmem [thread:$0]  %s3337_s13, 2048, %s3101_s29, [#allocation15], %s2961_s5, %s2961_s5, %s2962_s25  }
  0x4a   :  { %s2965_s19 = smov [#allocation2]   ;;  %s2966_s7 = smov [#allocation7]  }
  0x4b   :  { %s39_s1 = sshll.u32 %s2965_s19, 4  ;;  %s66_s27 = sshll.u32 %s2966_s7, 4  ;;  %s40_s1 = int_to_ptr.vmem [resolvable:$true] %s39_s1  ;;  %s67_s27 = int_to_ptr.vmem [resolvable:$true] %s66_s27 }
  0x4c   :  { %s2813_s24 = scalar_lea.hbm %s3327_s3, 4096 }
  0x4d   :  { %p2814_p4 = scmp.ne.s32.totalorder %s3327_s3, %s2813_s24  ;;  %p2817_p5 = scmp.lt.u32.totalorder %s2813_s24, %s3327_s3 }
  0x4f   :  { %p2819_p6 = pnand %p2817_p5, %p2814_p4 }
  0x51   :  { %2822 = shalt.err (!%p2819_p6)
}
  0x52   :  { %s2823_s13 = scalar_lea.vmem %s40_s1, 4096  ;;  %p2828_p8 = scmp.lt.s32.totalorder %s40_s1, %s40_s1 }
  0x53   :  { %p2824_p7 = scmp.ne.s32.totalorder %s40_s1, %s2823_s13  ;;  %p2829_p9 = scmp.lt.s32.totalorder %s2823_s13, %s2823_s13 }
  0x55   :  { %p2830_p10 = por %p2829_p9, %p2828_p8 }
  0x57   :  { %p2831_p11 = pnand %p2830_p10, %p2824_p7 }
  0x59   :  { %2834 = shalt.err (!%p2831_p11)
}
  0x5a   :  { %s3346_s29 = smov 32   ;;  %s3347_s30 = smov 512  }
  0x5b   :  { %45 = dma.hbm_to_vmem [thread:$0]  %s3327_s3, 4096, %s40_s1, [#allocation3], %s3347_s30, %s3347_s30, %s3346_s29  }
  0x5c   :  { %s2835_s7 = scalar_lea.hbm %s3330_s6, 64 }
  0x5d   :  { %p2836_p12 = scmp.ne.s32.totalorder %s3330_s6, %s2835_s7  ;;  %p2839_p13 = scmp.lt.u32.totalorder %s2835_s7, %s3330_s6 }
  0x5f   :  { %p2841_p0 = pnand %p2839_p13, %p2836_p12 }
  0x61   :  { %2844 = shalt.err (!%p2841_p0)
}
  0x62   :  { %s2845_s0 = scalar_lea.vmem %s67_s27, 64  ;;  %p2850_p2 = scmp.lt.s32.totalorder %s67_s27, %s67_s27 }
  0x63   :  { %p2846_p1 = scmp.ne.s32.totalorder %s67_s27, %s2845_s0  ;;  %p2851_p3 = scmp.lt.s32.totalorder %s2845_s0, %s2845_s0 }
  0x65   :  { %p2852_p4 = por %p2851_p3, %p2850_p2 }
  0x67   :  { %p2853_p5 = pnand %p2852_p4, %p2846_p1 }
  0x69   :  { %2856 = shalt.err (!%p2853_p5)
}
  0x6a   :  { %69 = dma.hbm_to_vmem [thread:$0]  %s3330_s6, 64, %s67_s27, [#allocation6]  }
  0x6b   :  { %s2967_s21 = smov [#allocation10]   ;;  %s2968_s13 = smov [#allocation13]  }
  0x6c   :  { %s89_s22 = sshll.u32 %s2967_s21, 4  ;;  %s111_s29 = sshll.u32 %s2968_s13, 4  ;;  %s90_s22 = int_to_ptr.vmem [resolvable:$true] %s89_s22  ;;  %s3162_s29 = int_to_ptr.vmem [resolvable:$true] %s111_s29 }
  0x6d   :  { %s2857_s10 = scalar_lea.hbm %s3333_s9, 2048 }
  0x6e   :  { %p2858_p6 = scmp.ne.s32.totalorder %s3333_s9, %s2857_s10  ;;  %p2861_p7 = scmp.lt.u32.totalorder %s2857_s10, %s3333_s9 }
  0x70   :  { %p2863_p8 = pnand %p2861_p7, %p2858_p6 }
  0x72   :  { %2866 = shalt.err (!%p2863_p8)
}
  0x73   :  { %s2867_s6 = scalar_lea.vmem %s90_s22, 2048  ;;  %p2872_p10 = scmp.lt.s32.totalorder %s90_s22, %s90_s22 }
  0x74   :  { %p2868_p9 = scmp.ne.s32.totalorder %s90_s22, %s2867_s6  ;;  %p2873_p11 = scmp.lt.s32.totalorder %s2867_s6, %s2867_s6 }
  0x76   :  { %p2874_p12 = por %p2873_p11, %p2872_p10 }
  0x78   :  { %p2875_p13 = pnand %p2874_p12, %p2868_p9 }
  0x7a   :  { %2878 = shalt.err (!%p2875_p13)
}
  0x7b   :  { %95 = dma.hbm_to_vmem [thread:$0]  %s3333_s9, 2048, %s90_s22, [#allocation9], %s2961_s5, %s2961_s5, %s2962_s25  }
  0x7c   :  { %s2879_s0 = scalar_lea.hbm %s3335_s11, 2048 }
  0x7d   :  { %p2880_p0 = scmp.ne.s32.totalorder %s3335_s11, %s2879_s0  ;;  %p2883_p1 = scmp.lt.u32.totalorder %s2879_s0, %s3335_s11 }
  0x7f   :  { %p2885_p2 = pnand %p2883_p1, %p2880_p0 }
  0x81   :  { %2888 = shalt.err (!%p2885_p2)
}
  0x82   :  { %s2889_s30 = scalar_lea.vmem %s3162_s29, 2048  ;;  %p2894_p4 = scmp.lt.s32.totalorder %s3162_s29, %s3162_s29 }
  0x83   :  { %p2890_p3 = scmp.ne.s32.totalorder %s3162_s29, %s2889_s30  ;;  %p2895_p5 = scmp.lt.s32.totalorder %s2889_s30, %s2889_s30 }
  0x85   :  { %p2896_p6 = por %p2895_p5, %p2894_p4 }
  0x87   :  { %p2897_p7 = pnand %p2896_p6, %p2890_p3 }
  0x89   :  { %2900 = shalt.err (!%p2897_p7)
}
  0x8a   :  { %117 = dma.hbm_to_vmem [thread:$0]  %s3335_s11, 2048, %s3162_s29, [#allocation12], %s2961_s5, %s2961_s5, %s2962_s25  }
  0x8b   :  { %s2969_s18 = smov [#allocation16]   ;;  %s2901_s7 = scalar_lea.hbm %s3339_s15, 2048 }
  0x8c   :  { %s139_s10 = sshll.u32 %s2969_s18, 4  ;;  %p2902_p8 = scmp.ne.s32.totalorder %s3339_s15, %s2901_s7  ;;  %s140_s10 = int_to_ptr.vmem [resolvable:$true] %s139_s10 }
  0x8d   :  { %p2905_p9 = scmp.lt.u32.totalorder %s2901_s7, %s3339_s15 }
  0x8f   :  { %p2907_p10 = pnand %p2905_p9, %p2902_p8 }
  0x91   :  { %2910 = shalt.err (!%p2907_p10)
}
  0x92   :  { %s2911_s24 = scalar_lea.vmem %s140_s10, 2048  ;;  %p2916_p12 = scmp.lt.s32.totalorder %s140_s10, %s140_s10 }
  0x93   :  { %p2912_p11 = scmp.ne.s32.totalorder %s140_s10, %s2911_s24  ;;  %p2917_p13 = scmp.lt.s32.totalorder %s2911_s24, %s2911_s24 }
  0x95   :  { %p2918_p0 = por %p2917_p13, %p2916_p12 }
  0x97   :  { %p2919_p1 = pnand %p2918_p0, %p2912_p11 }
  0x99   :  { %2922 = shalt.err (!%p2919_p1)
}
  0x9a   :  { %145 = dma.hbm_to_vmem [thread:$0]  %s3339_s15, 2048, %s140_s10, [#allocation15], %s2961_s5, %s2961_s5, %s2962_s25  }
  0x9b   :  { %2945 = dma.done.wait [#allocation3], 4096  }
  0x9c   :  { %2946 = vsyncadd [#allocation3], 4294963200 }
  0x9d   :  { %2947 = dma.done.wait [#allocation6], 32832  }
  0x9e   :  { %2948 = vsyncadd [#allocation6], 4294934464 }
  0x9f   :  { %2949 = dma.done.wait [#allocation9], 10240  }
  0xa0   :  { %2950 = vsyncadd [#allocation9], 4294957056 }
  0xa1   :  { %2951 = dma.done.wait [#allocation12], 2112  }
  0xa2   :  { %2952 = vsyncadd [#allocation12], 4294965184 }
  0xa3   :  { %2953 = dma.done.wait [#allocation15], 4096  }
  0xa4   :  { %2954 = vsyncadd [#allocation15], 4294963200  ;;  %v2970_v0 = vmov 0.0   ;;  %v177_v1 = vld [vmem:[#allocation2 + $0x8] sm:$0xff]  ;;  %v176_v3 = vld [vmem:[#allocation2] sm:$0xff]  ;;  %vm366_vm0 = vcmask 1043456  }
  0xa5   :  { %276 = vmatprep.mubr.f32.mxu0 %v2970_v0  ;;  %347 = vmatprep.mubr.f32.mxu1 %v2970_v0  ;;  %v181_v2 = vld [vmem:[#allocation2 + $0x28] sm:$0xff]  ;;  %v180_v5 = vld [vmem:[#allocation2 + $0x20] sm:$0xff]  ;;  %v179_v20 = vld [vmem:[#allocation2 + $0x18] sm:$0xff]  ;;  %s3348_s0 = sld [smem:[#allocation24_spill]]  ;;  %vm208_vm1 = vcmask 523264   ;;  %vm362_vm2 = vcmask 31744  }
  0xa6   :  { %v2243_v4 = vpack.c.bf16 %v181_v2, %v177_v1  ;;  %v185_v6 = vld [vmem:[#allocation2 + $0x48] sm:$0xff]  ;;  %v2245_v8 = vpack.c.bf16 %v180_v5, %v176_v3  ;;  %v184_v10 = vld [vmem:[#allocation2 + $0x40] sm:$0xff]  ;;  %v183_v21 = vld [vmem:[#allocation2 + $0x38] sm:$0xff]  ;;  %vm521_vm3 = vcmask 1041408   ;;  %s3349_s9 = sld [smem:[#allocation25_spill]]  ;;  %vm517_vm4 = vcmask 15360  }
  0xa7   :  { %v189_v7 = vld [vmem:[#allocation2 + $0x68] sm:$0xff]  ;;  %v188_v11 = vld [vmem:[#allocation2 + $0x60] sm:$0xff]  ;;  %v178_v22 = vld [vmem:[#allocation2 + $0x10] sm:$0xff]  ;;  %v2259_v24 = vpack.c.bf16 %v183_v21, %v179_v20  ;;  %vm2972_vm13 = vmmov 0   ;;  %s2973_s6 = smov [#allocation17]  }
  0xa8   :  { %v2247_v9 = vpack.c.bf16 %v189_v7, %v185_v6  ;;  %v193_v12 = vld [vmem:[#allocation2 + $0x88] sm:$0xff]  ;;  %2244 = vmatprep.subr.bf16.mxu0 %v2243_v4  ;;  %v2249_v14 = vpack.c.bf16 %v188_v11, %v184_v10  ;;  %v192_v15 = vld [vmem:[#allocation2 + $0x80] sm:$0xff]  ;;  %v182_v23 = vld [vmem:[#allocation2 + $0x30] sm:$0xff]  ;;  %s1925_s27 = sshll.u32 %s2973_s6, 4  ;;  %s1926_s27 = int_to_ptr.vmem [resolvable:$true] %s1925_s27 }
  0xa9   :  { %v197_v13 = vld [vmem:[#allocation2 + $0xa8] sm:$0xff]  ;;  %2246 = vmatpush1.bf16.msra.mxu0 %v2245_v8  ;;  %v196_v16 = vld [vmem:[#allocation2 + $0xa0] sm:$0xff]  ;;  %v2261_v25 = vpack.c.bf16 %v182_v23, %v178_v22  ;;  %v187_v26 = vld [vmem:[#allocation2 + $0x58] sm:$0xff]  ;;  %2260 = vmatprep.subr.bf16.mxu1 %v2259_v24  ;;  %s2923_s23 = scalar_lea.vmem %s1926_s27, 128  ;;  %p2928_p3 = scmp.lt.s32.totalorder %s1926_s27, %s1926_s27 }
  0xaa   :  { %2248 = vmatprep.subr.bf16.mxu0 %v2247_v9  ;;  %v2251_v17 = vpack.c.bf16 %v197_v13, %v193_v12  ;;  %v201_v18 = vld [vmem:[#allocation2 + $0xc8] sm:$0xff]  ;;  %v191_v27 = vld [vmem:[#allocation2 + $0x78] sm:$0xff]  ;;  %v186_v28 = vld [vmem:[#allocation2 + $0x50] sm:$0xff]  ;;  %v2253_v29 = vpack.c.bf16 %v196_v16, %v192_v15  ;;  %p2924_p2 = scmp.ne.s32.totalorder %s1926_s27, %s2923_s23  ;;  %p2929_p4 = scmp.lt.s32.totalorder %s2923_s23, %s2923_s23 }
  0xab   :  { %v205_v19 = vld [vmem:[#allocation2 + $0xe8] sm:$0xff]  ;;  %v2263_v30 = vpack.c.bf16 %v191_v27, %v187_v26  ;;  %v190_v31 = vld [vmem:[#allocation2 + $0x70] sm:$0xff]  ;;  %v195_v32 = vld [vmem:[#allocation2 + $0x98] sm:$0xff]  ;;  %2262 = vmatpush1.bf16.msra.mxu1 %v2261_v25 }
  0xac   :  { %v199_v33 = vld [vmem:[#allocation2 + $0xb8] sm:$0xff]  ;;  %v2255_v34 = vpack.c.bf16 %v205_v19, %v201_v18  ;;  %v200_v35 = vld [vmem:[#allocation2 + $0xc0] sm:$0xff]  ;;  %v2265_v37 = vpack.c.bf16 %v190_v31, %v186_v28  ;;  %v194_v39 = vld [vmem:[#allocation2 + $0x90] sm:$0xff]  ;;  %p2930_p5 = por %p2929_p4, %p2928_p3 }
  0xad   :  { %2250 = vmatpush1.bf16.msra.mxu0 %v2249_v14  ;;  %v204_v36 = vld [vmem:[#allocation2 + $0xe0] sm:$0xff]  ;;  %2264 = vmatprep.subr.bf16.mxu1 %v2263_v30  ;;  %v2267_v38 = vpack.c.bf16 %v199_v33, %v195_v32  ;;  %v198_v40 = vld [vmem:[#allocation2 + $0xb0] sm:$0xff]  ;;  %v203_v43 = vld [vmem:[#allocation2 + $0xd8] sm:$0xff] }
  0xae   :  { %2252 = vmatprep.subr.bf16.mxu0 %v2251_v17  ;;  %v356_v41 = vld [vmem:[%s3328_s4] sm:$0xff]  ;;  %v2257_v42 = vpack.c.bf16 %v204_v36, %v200_v35  ;;  %v207_v44 = vld [vmem:[#allocation2 + $0xf8] sm:$0xff]  ;;  %v2269_v46 = vpack.c.bf16 %v198_v40, %v194_v39  ;;  %v689_v55 = vld [vmem:[#allocation5 + $0x8] sm:$0xff]  ;;  %p2931_p6 = pnand %p2930_p5, %p2924_p2 }
  0xaf   :  { %v360_v45 = vcombine.high %v356_v41, %v356_v41  ;;  %2266 = vmatpush1.bf16.msra.mxu1 %v2265_v37  ;;  %v2271_v47 = vpack.c.bf16 %v207_v44, %v203_v43  ;;  %v202_v48 = vld [vmem:[#allocation2 + $0xd0] sm:$0xff]  ;;  %v357_v53 = vld [vmem:[%s3328_s4 + $0x8] sm:$0xff]  ;;  %v693_v56 = vld [vmem:[#allocation5 + $0x28] sm:$0xff] }
  0xb0   :  { %2268 = vmatprep.subr.bf16.mxu1 %v2267_v38  ;;  %v206_v49 = vld [vmem:[#allocation2 + $0xf0] sm:$0xff]  ;;  %v361_v54 = vcombine.high %v357_v53, %v357_v53  ;;  %v688_v57 = vld [vmem:[#allocation5] sm:$0xff]  ;;  %v697_v59 = vld [vmem:[#allocation5 + $0x48] sm:$0xff]  ;;  %v2275_v62 = vpack.c.bf16 %v693_v56, %v689_v55 }
  0xb1   :  { %2254 = vmatpush1.bf16.msra.mxu0 %v2253_v29  ;;  %v175_v50 = vld [vmem:[%s3348_s0] sm:$0x3]  ;;  %v2273_v51 = vpack.c.bf16 %v206_v49, %v202_v48  ;;  %v692_v58 = vld [vmem:[#allocation5 + $0x20] sm:$0xff]  ;;  %v701_v60 = vld [vmem:[#allocation5 + $0x68] sm:$0xff] }
  0xb2   :  { %2256 = vmatprep.subr.bf16.mxu0 %v2255_v34  ;;  %v355_v52 = vld [vmem:[%s3326_s2] sm:$0xff]  ;;  %v2277_v2 = vpack.c.bf16 %v692_v58, %v688_v57  ;;  %v2279_v3 = vpack.c.bf16 %v701_v60, %v697_v59  ;;  %v696_v4 = vld [vmem:[#allocation5 + $0x40] sm:$0xff]  ;;  %v691_v6 = vld [vmem:[#allocation5 + $0x18] sm:$0xff] }
  0xb3   :  { %2270 = vmatpush1.bf16.msra.mxu1 %v2269_v46  ;;  %v354_v1 = vld [vmem:[%s3349_s9] sm:$0xff]  ;;  %v700_v5 = vld [vmem:[#allocation5 + $0x60] sm:$0xff]  ;;  %v695_v7 = vld [vmem:[#allocation5 + $0x38] sm:$0xff] }
  0xb4   :  { %2272 = vmatprep.subr.bf16.mxu1 %v2271_v47  ;;  %v690_v8 = vld [vmem:[#allocation5 + $0x10] sm:$0xff]  ;;  %v705_v10 = vld [vmem:[#allocation5 + $0x88] sm:$0xff]  ;;  %v699_v12 = vld [vmem:[#allocation5 + $0x58] sm:$0xff]  ;;  %v2281_v14 = vpack.c.bf16 %v700_v5, %v696_v4  ;;  %v2403_v16 = vpack.c.bf16 %v695_v7, %v691_v6 }
  0xb5   :  { %2258 = vmatpush1.bf16.msra.mxu0 %v2257_v42  ;;  %v694_v9 = vld [vmem:[#allocation5 + $0x30] sm:$0xff]  ;;  %v709_v11 = vld [vmem:[#allocation5 + $0xa8] sm:$0xff]  ;;  %v703_v13 = vld [vmem:[#allocation5 + $0x78] sm:$0xff] }
  0xb6   :  { %1940 = vmatprep.subr.msk.mxu0 %vm366_vm0, %v360_v45  ;;  %v704_v17 = vld [vmem:[#allocation5 + $0x80] sm:$0xff]  ;;  %v2405_v20 = vpack.c.bf16 %v694_v9, %v690_v8  ;;  %v2283_v21 = vpack.c.bf16 %v709_v11, %v705_v10  ;;  %v713_v22 = vld [vmem:[#allocation5 + $0xc8] sm:$0xff]  ;;  %v2407_v24 = vpack.c.bf16 %v703_v13, %v699_v12  ;;  %v698_v25 = vld [vmem:[#allocation5 + $0x50] sm:$0xff] }
  0xb7   :  { %2274 = vmatpush1.bf16.msra.mxu1 %v2273_v51  ;;  %v708_v18 = vld [vmem:[#allocation5 + $0xa0] sm:$0xff]  ;;  %v717_v23 = vld [vmem:[#allocation5 + $0xe8] sm:$0xff]  ;;  %v702_v26 = vld [vmem:[#allocation5 + $0x70] sm:$0xff] }
  0xb8   :  { %1938 = vmatmul.mubr.msk.f32.vlgmr.msra.gmra.mrb[0].mxu0 %vm208_vm1, %v175_v50  ;;  %1943 = vmatprep.subr.msk.mxu1 %vm366_vm0, %v361_v54  ;;  %v707_v27 = vld [vmem:[#allocation5 + $0x98] sm:$0xff]  ;;  %v2285_v29 = vpack.c.bf16 %v708_v18, %v704_v17  ;;  %v2287_v30 = vpack.c.bf16 %v717_v23, %v713_v22  ;;  %v712_v31 = vld [vmem:[#allocation5 + $0xc0] sm:$0xff]  ;;  %v2409_v33 = vpack.c.bf16 %v702_v26, %v698_v25  ;;  %v721_v34 = vld [vmem:[#allocation5 + $0x108] sm:$0xff] }
  0xb9   :  { %1941 = vmatpush1.msk.msra.mxu0 %vm366_vm0, %v356_v41  ;;  %439 = vmatprep.mubr.f32.mxu0 %v2970_v0  ;;  %v711_v28 = vld [vmem:[#allocation5 + $0xb8] sm:$0xff]  ;;  %v716_v32 = vld [vmem:[#allocation5 + $0xe0] sm:$0xff]  ;;  %v725_v35 = vld [vmem:[#allocation5 + $0x128] sm:$0xff] }
  0xba   :  { %1939 = vmatmul.mubr.msk.f32.vlgmr.msra.gmra.mrb[0].mxu1 %vm208_vm1, %v175_v50  ;;  %v2411_v36 = vpack.c.bf16 %v711_v28, %v707_v27  ;;  %v706_v37 = vld [vmem:[#allocation5 + $0x90] sm:$0xff]  ;;  %v715_v39 = vld [vmem:[#allocation5 + $0xd8] sm:$0xff]  ;;  %v2289_v41 = vpack.c.bf16 %v716_v32, %v712_v31  ;;  %v2291_v42 = vpack.c.bf16 %v725_v35, %v721_v34  ;;  %v720_v43 = vld [vmem:[#allocation5 + $0x100] sm:$0xff] }
  0xbb   :  { %510 = vmatprep.mubr.f32.mxu1 %v2970_v0  ;;  %1944 = vmatpush1.msk.msra.mxu1 %vm366_vm0, %v357_v53  ;;  %v710_v38 = vld [vmem:[#allocation5 + $0xb0] sm:$0xff]  ;;  %v719_v40 = vld [vmem:[#allocation5 + $0xf8] sm:$0xff]  ;;  %v724_v44 = vld [vmem:[#allocation5 + $0x120] sm:$0xff] }
  0xbc   :  { %1942 = vmatmul.mubr.msk.f32.vlgmr.msra.gmra.mrb[2].mxu0 %vm362_vm2, %v355_v52  ;;  %v2413_v45 = vpack.c.bf16 %v710_v38, %v706_v37  ;;  %v729_v46 = vld [vmem:[#allocation5 + $0x148] sm:$0xff]  ;;  %v2415_v48 = vpack.c.bf16 %v719_v40, %v715_v39  ;;  %v714_v49 = vld [vmem:[#allocation5 + $0xd0] sm:$0xff]  ;;  %v723_v51 = vld [vmem:[#allocation5 + $0x118] sm:$0xff]  ;;  %v2293_v53 = vpack.c.bf16 %v724_v44, %v720_v43 }
  0xbd   :  { %598 = vmatprep.mubr.f32.mxu0 %v2970_v0  ;;  %v733_v47 = vld [vmem:[#allocation5 + $0x168] sm:$0xff]  ;;  %v718_v50 = vld [vmem:[#allocation5 + $0xf0] sm:$0xff]  ;;  %v728_v55 = vld [vmem:[#allocation5 + $0x140] sm:$0xff] }
  0xbe   :  { %1945 = vmatmul.mubr.msk.f32.vlgmr.msra.gmra.mrb[2].mxu1 %vm362_vm2, %v355_v52  ;;  %v727_v52 = vld [vmem:[#allocation5 + $0x138] sm:$0xff]  ;;  %v2295_v54 = vpack.c.bf16 %v733_v47, %v729_v46  ;;  %v732_v56 = vld [vmem:[#allocation5 + $0x160] sm:$0xff]  ;;  %v2417_v57 = vpack.c.bf16 %v718_v50, %v714_v49  ;;  %v737_v58 = vld [vmem:[#allocation5 + $0x188] sm:$0xff] }
  0xbf   :  { %669 = vmatprep.mubr.f32.mxu1 %v2970_v0  ;;  %v741_v59 = vld [vmem:[#allocation5 + $0x1a8] sm:$0xff]  ;;  %v2419_v60 = vpack.c.bf16 %v727_v52, %v723_v51  ;;  %v736_v4 = vld [vmem:[#allocation5 + $0x180] sm:$0xff]  ;;  %v730_v10 = vld [vmem:[#allocation5 + $0x150] sm:$0xff] }
  0xc0   :  { %v740_v5 = vld [vmem:[#allocation5 + $0x1a0] sm:$0xff]  ;;  %v745_v7 = vld [vmem:[#allocation5 + $0x1c8] sm:$0xff]  ;;  %v734_v11 = vld [vmem:[#allocation5 + $0x170] sm:$0xff] }
  0xc1   :  { %v749_v8 = vld [vmem:[#allocation5 + $0x1e8] sm:$0xff]  ;;  %v739_v12 = vld [vmem:[#allocation5 + $0x198] sm:$0xff]  ;;  %v748_v17 = vld [vmem:[#allocation5 + $0x1e0] sm:$0xff]  ;;  %v2425_v18 = vpack.c.bf16 %v734_v11, %v730_v10 }
  0xc2   :  { %v743_v13 = vld [vmem:[#allocation5 + $0x1b8] sm:$0xff]  ;;  %v738_v22 = vld [vmem:[#allocation5 + $0x190] sm:$0xff]  ;;  %v752_v28 = vld [vmem:[#allocation5 + $0x200] sm:$0xff] }
  0xc3   :  { %v742_v23 = vld [vmem:[#allocation5 + $0x1b0] sm:$0xff]  ;;  %v751_v25 = vld [vmem:[#allocation5 + $0x1f8] sm:$0xff]  ;;  %v761_v31 = vld [vmem:[#allocation5 + $0x248] sm:$0xff] }
  0xc4   :  { %v765_v32 = vld [vmem:[#allocation5 + $0x268] sm:$0xff]  ;;  %v746_v34 = vld [vmem:[#allocation5 + $0x1d0] sm:$0xff]  ;;  %v759_v37 = vld [vmem:[#allocation5 + $0x238] sm:$0xff] }
  0xc5   :  { %v750_v35 = vld [vmem:[#allocation5 + $0x1f0] sm:$0xff]  ;;  %v2311_v39 = vpack.c.bf16 %v765_v32, %v761_v31  ;;  %v760_v40 = vld [vmem:[#allocation5 + $0x240] sm:$0xff]  ;;  %v769_v43 = vld [vmem:[#allocation5 + $0x288] sm:$0xff] }
  0xc6   :  { %v773_v44 = vld [vmem:[#allocation5 + $0x2a8] sm:$0xff]  ;;  %v754_v46 = vld [vmem:[#allocation5 + $0x210] sm:$0xff]  ;;  %v767_v49 = vld [vmem:[#allocation5 + $0x278] sm:$0xff] }
  0xc7   :  { %v758_v47 = vld [vmem:[#allocation5 + $0x230] sm:$0xff]  ;;  %v2315_v51 = vpack.c.bf16 %v773_v44, %v769_v43  ;;  %v768_v52 = vld [vmem:[#allocation5 + $0x280] sm:$0xff]  ;;  %v783_v10 = vld [vmem:[#allocation5 + $0x2f8] sm:$0xff] }
  0xc8   :  { %v786_v31 = vld [vmem:[#allocation5 + $0x310] sm:$0xff]  ;;  %v803_v43 = vld [vmem:[#allocation5 + $0x398] sm:$0xff] }
  0xc9   :  { %v790_v32 = vld [vmem:[#allocation5 + $0x330] sm:$0xff]  ;;  %v807_v44 = vld [vmem:[#allocation5 + $0x3b8] sm:$0xff] }
 0x18b   :  { %v278_v61 = vpop.f32.mrb[0].mxu0 }
 0x18c   :  { %v280_v63 = vpop.f32.mrb[1].mxu0 }
 0x18d   :  { %1946 = vmatprep.subr.msk.mxu0 %vm521_vm3, %v280_v63  ;;  %v349_v15 = vpop.f32.mrb[0].mxu1  ;;  %v731_v63 = vld [vmem:[#allocation5 + $0x158] sm:$0xff] }
 0x18e   :  { %1947 = vmatpush1.msk.msra.mxu0 %vm521_vm3, %v278_v61  ;;  %v351_v19 = vpop.f32.mrb[1].mxu1  ;;  %v722_v61 = vld [vmem:[#allocation5 + $0x110] sm:$0xff] }
 0x18f   :  { %1948 = vmatmul.mubr.msk.f32.vlgmr.msra.gmra.mrb[2].mxu0 %vm517_vm4, %v354_v1  ;;  %2276 = vmatprep.subr.bf16.mxu0 %v2275_v62  ;;  %v726_v62 = vld [vmem:[#allocation5 + $0x130] sm:$0xff] }
 0x190   :  { %2278 = vmatpush1.bf16.msra.mxu0 %v2277_v2  ;;  %1949 = vmatprep.subr.msk.mxu1 %vm521_vm3, %v351_v19  ;;  %v2297_v2 = vpack.c.bf16 %v732_v56, %v728_v55  ;;  %v2421_v6 = vpack.c.bf16 %v726_v62, %v722_v61  ;;  %v753_v19 = vld [vmem:[#allocation5 + $0x208] sm:$0xff]  ;;  %v775_v61 = vld [vmem:[#allocation5 + $0x2b8] sm:$0xff] }
 0x191   :  { %2280 = vmatprep.subr.bf16.mxu0 %v2279_v3  ;;  %1950 = vmatpush1.msk.msra.mxu1 %vm521_vm3, %v349_v15  ;;  %v2299_v3 = vpack.c.bf16 %v741_v59, %v737_v58  ;;  %v2303_v15 = vpack.c.bf16 %v749_v8, %v745_v7  ;;  %v777_v55 = vld [vmem:[#allocation5 + $0x2c8] sm:$0xff]  ;;  %v762_v58 = vld [vmem:[#allocation5 + $0x250] sm:$0xff] }
 0x192   :  { %1951 = vmatmul.mubr.msk.f32.vlgmr.msra.gmra.mrb[2].mxu1 %vm517_vm4, %v354_v1  ;;  %2404 = vmatprep.subr.bf16.mxu1 %v2403_v16  ;;  %v735_v1 = vld [vmem:[#allocation5 + $0x178] sm:$0xff]  ;;  %v744_v16 = vld [vmem:[#allocation5 + $0x1c0] sm:$0xff]  ;;  %v781_v56 = vld [vmem:[#allocation5 + $0x2e8] sm:$0xff] }
 0x193   :  { %2406 = vmatpush1.bf16.msra.mxu1 %v2405_v20  ;;  %v2423_v9 = vpack.c.bf16 %v735_v1, %v731_v63  ;;  %v757_v20 = vld [vmem:[#allocation5 + $0x228] sm:$0xff]  ;;  %v2305_v26 = vpack.c.bf16 %v748_v17, %v744_v16  ;;  %v766_v59 = vld [vmem:[#allocation5 + $0x270] sm:$0xff]  ;;  %v2319_v63 = vpack.c.bf16 %v781_v56, %v777_v55  ;;  %v776_v1 = vld [vmem:[#allocation5 + $0x2c0] sm:$0xff] }
 0x194   :  { %2282 = vmatpush1.bf16.msra.mxu0 %v2281_v14  ;;  %2408 = vmatprep.subr.bf16.mxu1 %v2407_v24  ;;  %v2301_v14 = vpack.c.bf16 %v740_v5, %v736_v4  ;;  %v747_v24 = vld [vmem:[#allocation5 + $0x1d8] sm:$0xff]  ;;  %v2307_v27 = vpack.c.bf16 %v757_v20, %v753_v19  ;;  %v785_v4 = vld [vmem:[#allocation5 + $0x308] sm:$0xff]  ;;  %v770_v7 = vld [vmem:[#allocation5 + $0x290] sm:$0xff] }
 0x195   :  { %2284 = vmatprep.subr.bf16.mxu0 %v2283_v21  ;;  %v2427_v21 = vpack.c.bf16 %v743_v13, %v739_v12  ;;  %v789_v5 = vld [vmem:[#allocation5 + $0x328] sm:$0xff]  ;;  %v774_v8 = vld [vmem:[#allocation5 + $0x2b0] sm:$0xff]  ;;  %v784_v13 = vld [vmem:[#allocation5 + $0x300] sm:$0xff] }
 0x196   :  { %v2323_v12 = vpack.c.bf16 %v789_v5, %v785_v4  ;;  %v793_v16 = vld [vmem:[#allocation5 + $0x348] sm:$0xff]  ;;  %v778_v19 = vld [vmem:[#allocation5 + $0x2d0] sm:$0xff]  ;;  %v815_v55 = vld [vmem:[#allocation5 + $0x3f8] sm:$0xff] }
 0x197   :  { %2410 = vmatpush1.bf16.msra.mxu1 %v2409_v33  ;;  %v2431_v33 = vpack.c.bf16 %v751_v25, %v747_v24  ;;  %v797_v17 = vld [vmem:[#allocation5 + $0x368] sm:$0xff]  ;;  %v782_v20 = vld [vmem:[#allocation5 + $0x2f0] sm:$0xff]  ;;  %v792_v25 = vld [vmem:[#allocation5 + $0x340] sm:$0xff] }
 0x198   :  { %2286 = vmatpush1.bf16.msra.mxu0 %v2285_v29  ;;  %2412 = vmatprep.subr.bf16.mxu1 %v2411_v36  ;;  %v756_v29 = vld [vmem:[#allocation5 + $0x220] sm:$0xff]  ;;  %v755_v36 = vld [vmem:[#allocation5 + $0x218] sm:$0xff]  ;;  %v2327_v24 = vpack.c.bf16 %v797_v17, %v793_v16 }
 0x199   :  { %2288 = vmatprep.subr.bf16.mxu0 %v2287_v30  ;;  %v2429_v30 = vpack.c.bf16 %v742_v23, %v738_v22  ;;  %v2309_v38 = vpack.c.bf16 %v756_v29, %v752_v28  ;;  %v791_v22 = vld [vmem:[#allocation5 + $0x338] sm:$0xff]  ;;  %v801_v28 = vld [vmem:[#allocation5 + $0x388] sm:$0xff]  ;;  %v808_v56 = vld [vmem:[#allocation5 + $0x3c0] sm:$0xff] }
 0x19a   :  { %v805_v29 = vld [vmem:[#allocation5 + $0x3a8] sm:$0xff]  ;;  %v823_v4 = vld [vmem:[#allocation5 + $0x438] sm:$0xff] }
 0x19b   :  { %2414 = vmatpush1.bf16.msra.mxu1 %v2413_v45  ;;  %v2435_v45 = vpack.c.bf16 %v759_v37, %v755_v36  ;;  %v2331_v36 = vpack.c.bf16 %v805_v29, %v801_v28  ;;  %v800_v37 = vld [vmem:[#allocation5 + $0x380] sm:$0xff]  ;;  %v831_v16 = vld [vmem:[#allocation5 + $0x478] sm:$0xff]  ;;  %v837_v29 = vld [vmem:[#allocation5 + $0x4a8] sm:$0xff] }
 0x19c   :  { %2290 = vmatpush1.bf16.msra.mxu0 %v2289_v41  ;;  %2416 = vmatprep.subr.bf16.mxu1 %v2415_v48  ;;  %v764_v41 = vld [vmem:[#allocation5 + $0x260] sm:$0xff]  ;;  %v763_v48 = vld [vmem:[#allocation5 + $0x258] sm:$0xff] }
 0x19d   :  { %2292 = vmatprep.subr.bf16.mxu0 %v2291_v42  ;;  %v2433_v42 = vpack.c.bf16 %v750_v35, %v746_v34  ;;  %v2313_v50 = vpack.c.bf16 %v764_v41, %v760_v40  ;;  %v799_v34 = vld [vmem:[#allocation5 + $0x378] sm:$0xff]  ;;  %v794_v41 = vld [vmem:[#allocation5 + $0x350] sm:$0xff] }
 0x19f   :  { %2418 = vmatpush1.bf16.msra.mxu1 %v2417_v57  ;;  %v2439_v57 = vpack.c.bf16 %v767_v49, %v763_v48  ;;  %v802_v48 = vld [vmem:[#allocation5 + $0x390] sm:$0xff] }
 0x1a0   :  { %2294 = vmatpush1.bf16.msra.mxu0 %v2293_v53  ;;  %2420 = vmatprep.subr.bf16.mxu1 %v2419_v60  ;;  %v772_v53 = vld [vmem:[#allocation5 + $0x2a0] sm:$0xff]  ;;  %v771_v60 = vld [vmem:[#allocation5 + $0x298] sm:$0xff]  ;;  %v806_v49 = vld [vmem:[#allocation5 + $0x3b0] sm:$0xff] }
 0x1a1   :  { %2296 = vmatprep.subr.bf16.mxu0 %v2295_v54  ;;  %v2437_v54 = vpack.c.bf16 %v758_v47, %v754_v46  ;;  %v2317_v62 = vpack.c.bf16 %v772_v53, %v768_v52  ;;  %v2459_v47 = vpack.c.bf16 %v807_v44, %v803_v43  ;;  %v813_v52 = vld [vmem:[#allocation5 + $0x3e8] sm:$0xff]  ;;  %v811_v53 = vld [vmem:[#allocation5 + $0x3d8] sm:$0xff] }
 0x1a2   :  { %v845_v44 = vld [vmem:[#allocation5 + $0x4e8] sm:$0xff] }
 0x1a3   :  { %2422 = vmatpush1.bf16.msra.mxu1 %v2421_v6  ;;  %v2443_v6 = vpack.c.bf16 %v775_v61, %v771_v60  ;;  %v810_v60 = vld [vmem:[#allocation5 + $0x3d0] sm:$0xff] }
 0x1a4   :  { %2298 = vmatpush1.bf16.msra.mxu0 %v2297_v2  ;;  %2424 = vmatprep.subr.bf16.mxu1 %v2423_v9  ;;  %v780_v2 = vld [vmem:[#allocation5 + $0x2e0] sm:$0xff]  ;;  %v779_v9 = vld [vmem:[#allocation5 + $0x2d8] sm:$0xff]  ;;  %v814_v61 = vld [vmem:[#allocation5 + $0x3f0] sm:$0xff] }
 0x1a5   :  { %2300 = vmatprep.subr.bf16.mxu0 %v2299_v3  ;;  %v2441_v3 = vpack.c.bf16 %v766_v59, %v762_v58  ;;  %v2321_v11 = vpack.c.bf16 %v780_v2, %v776_v1  ;;  %v2463_v58 = vpack.c.bf16 %v815_v55, %v811_v53  ;;  %v821_v1 = vld [vmem:[#allocation5 + $0x428] sm:$0xff]  ;;  %v819_v2 = vld [vmem:[#allocation5 + $0x418] sm:$0xff]  ;;  %v846_v55 = vld [vmem:[#allocation5 + $0x4f0] sm:$0xff] }
 0x1a6   :  { %v2467_v5 = vpack.c.bf16 %v823_v4, %v819_v2  ;;  %v854_v4 = vld [vmem:[#allocation5 + $0x530] sm:$0xff] }
 0x1a7   :  { %2426 = vmatpush1.bf16.msra.mxu1 %v2425_v18  ;;  %v2447_v18 = vpack.c.bf16 %v783_v10, %v779_v9  ;;  %v818_v9 = vld [vmem:[#allocation5 + $0x410] sm:$0xff] }
 0x1a8   :  { %2302 = vmatpush1.bf16.msra.mxu0 %v2301_v14  ;;  %2428 = vmatprep.subr.bf16.mxu1 %v2427_v21  ;;  %v788_v14 = vld [vmem:[#allocation5 + $0x320] sm:$0xff]  ;;  %v787_v21 = vld [vmem:[#allocation5 + $0x318] sm:$0xff]  ;;  %v822_v10 = vld [vmem:[#allocation5 + $0x430] sm:$0xff] }
 0x1a9   :  { %2304 = vmatprep.subr.bf16.mxu0 %v2303_v15  ;;  %v2445_v15 = vpack.c.bf16 %v774_v8, %v770_v7  ;;  %v2325_v23 = vpack.c.bf16 %v788_v14, %v784_v13  ;;  %v820_v7 = vld [vmem:[#allocation5 + $0x420] sm:$0xff]  ;;  %v829_v14 = vld [vmem:[#allocation5 + $0x468] sm:$0xff] }
 0x1ab   :  { %2430 = vmatpush1.bf16.msra.mxu1 %v2429_v30  ;;  %v2451_v30 = vpack.c.bf16 %v791_v22, %v787_v21  ;;  %v828_v21 = vld [vmem:[#allocation5 + $0x460] sm:$0xff] }
 0x1ac   :  { %2306 = vmatpush1.bf16.msra.mxu0 %v2305_v26  ;;  %2432 = vmatprep.subr.bf16.mxu1 %v2431_v33  ;;  %v796_v26 = vld [vmem:[#allocation5 + $0x360] sm:$0xff]  ;;  %v795_v33 = vld [vmem:[#allocation5 + $0x358] sm:$0xff] }
 0x1ad   :  { %2308 = vmatprep.subr.bf16.mxu0 %v2307_v27  ;;  %v2449_v27 = vpack.c.bf16 %v782_v20, %v778_v19  ;;  %v2329_v35 = vpack.c.bf16 %v796_v26, %v792_v25  ;;  %v2455_v40 = vpack.c.bf16 %v799_v34, %v795_v33  ;;  %v2469_v19 = vpack.c.bf16 %v822_v10, %v818_v9  ;;  %v824_v20 = vld [vmem:[#allocation5 + $0x440] sm:$0xff]  ;;  %v826_v25 = vld [vmem:[#allocation5 + $0x450] sm:$0xff] }
 0x1ae   :  { %v830_v26 = vld [vmem:[#allocation5 + $0x470] sm:$0xff]  ;;  %v2345_v33 = vpack.c.bf16 %v828_v21, %v824_v20  ;;  %v871_v20 = vld [vmem:[#allocation5 + $0x5b8] sm:$0xff] }
 0x1af   :  { %2434 = vmatpush1.bf16.msra.mxu1 %v2433_v42  ;;  %v798_v42 = vld [vmem:[#allocation5 + $0x370] sm:$0xff]  ;;  %v2473_v34 = vpack.c.bf16 %v830_v26, %v826_v25 }
 0x1b0   :  { %2310 = vmatpush1.bf16.msra.mxu0 %v2309_v38  ;;  %2436 = vmatprep.subr.bf16.mxu1 %v2435_v45  ;;  %v804_v38 = vld [vmem:[#allocation5 + $0x3a0] sm:$0xff]  ;;  %v2457_v46 = vpack.c.bf16 %v798_v42, %v794_v41  ;;  %v838_v41 = vld [vmem:[#allocation5 + $0x4b0] sm:$0xff]  ;;  %v841_v42 = vld [vmem:[#allocation5 + $0x4c8] sm:$0xff] }
 0x1b1   :  { %2312 = vmatprep.subr.bf16.mxu0 %v2311_v39  ;;  %v2453_v39 = vpack.c.bf16 %v790_v32, %v786_v31  ;;  %v2333_v45 = vpack.c.bf16 %v804_v38, %v800_v37  ;;  %v839_v31 = vld [vmem:[#allocation5 + $0x4b8] sm:$0xff] }
 0x1b3   :  { %2438 = vmatpush1.bf16.msra.mxu1 %v2437_v54 }
 0x1b4   :  { %2314 = vmatpush1.bf16.msra.mxu0 %v2313_v50  ;;  %2440 = vmatprep.subr.bf16.mxu1 %v2439_v57  ;;  %v2461_v50 = vpack.c.bf16 %v806_v49, %v802_v48  ;;  %v812_v57 = vld [vmem:[#allocation5 + $0x3e0] sm:$0xff] }
 0x1b5   :  { %2316 = vmatprep.subr.bf16.mxu0 %v2315_v51  ;;  %v809_v51 = vld [vmem:[#allocation5 + $0x3c8] sm:$0xff]  ;;  %v2337_v59 = vpack.c.bf16 %v812_v57, %v808_v56 }
 0x1b6   :  { %v2335_v54 = vpack.c.bf16 %v813_v52, %v809_v51  ;;  %v844_v51 = vld [vmem:[#allocation5 + $0x4e0] sm:$0xff]  ;;  %v2351_v52 = vpack.c.bf16 %v845_v44, %v841_v42  ;;  %v849_v56 = vld [vmem:[#allocation5 + $0x508] sm:$0xff]  ;;  %v883_v44 = vld [vmem:[#allocation5 + $0x618] sm:$0xff] }
 0x1b7   :  { %2442 = vmatpush1.bf16.msra.mxu1 %v2441_v3  ;;  %v853_v57 = vld [vmem:[#allocation5 + $0x528] sm:$0xff] }
 0x1b8   :  { %2318 = vmatpush1.bf16.msra.mxu0 %v2317_v62  ;;  %2444 = vmatprep.subr.bf16.mxu1 %v2443_v6  ;;  %v2465_v62 = vpack.c.bf16 %v814_v61, %v810_v60  ;;  %v816_v6 = vld [vmem:[#allocation5 + $0x400] sm:$0xff]  ;;  %v881_v42 = vld [vmem:[#allocation5 + $0x608] sm:$0xff] }
 0x1b9   :  { %2320 = vmatprep.subr.bf16.mxu0 %v2319_v63  ;;  %v817_v63 = vld [vmem:[#allocation5 + $0x408] sm:$0xff] }
 0x1ba   :  { %v2339_v3 = vpack.c.bf16 %v821_v1, %v817_v63  ;;  %v852_v63 = vld [vmem:[#allocation5 + $0x520] sm:$0xff]  ;;  %v2355_v1 = vpack.c.bf16 %v853_v57, %v849_v56  ;;  %v891_v56 = vld [vmem:[#allocation5 + $0x658] sm:$0xff] }
 0x1bb   :  { %2446 = vmatpush1.bf16.msra.mxu1 %v2445_v15  ;;  %v827_v15 = vld [vmem:[#allocation5 + $0x458] sm:$0xff] }
 0x1bc   :  { %2322 = vmatpush1.bf16.msra.mxu0 %v2321_v11  ;;  %2448 = vmatprep.subr.bf16.mxu1 %v2447_v18  ;;  %v825_v11 = vld [vmem:[#allocation5 + $0x448] sm:$0xff]  ;;  %v2341_v18 = vpack.c.bf16 %v820_v7, %v816_v6  ;;  %v859_v7 = vld [vmem:[#allocation5 + $0x558] sm:$0xff] }
 0x1bd   :  { %2324 = vmatprep.subr.bf16.mxu0 %v2323_v12  ;;  %v861_v6 = vld [vmem:[#allocation5 + $0x568] sm:$0xff]  ;;  %v895_v57 = vld [vmem:[#allocation5 + $0x678] sm:$0xff] }
 0x1bf   :  { %2450 = vmatpush1.bf16.msra.mxu1 %v2449_v27  ;;  %v833_v27 = vld [vmem:[#allocation5 + $0x488] sm:$0xff] }
 0x1c0   :  { %2326 = vmatpush1.bf16.msra.mxu0 %v2325_v23  ;;  %2452 = vmatprep.subr.bf16.mxu1 %v2451_v30  ;;  %v2343_v23 = vpack.c.bf16 %v829_v14, %v825_v11  ;;  %v835_v30 = vld [vmem:[#allocation5 + $0x498] sm:$0xff]  ;;  %v2347_v38 = vpack.c.bf16 %v837_v29, %v833_v27  ;;  %v856_v11 = vld [vmem:[#allocation5 + $0x540] sm:$0xff]  ;;  %v866_v27 = vld [vmem:[#allocation5 + $0x590] sm:$0xff] }
 0x1c1   :  { %2328 = vmatprep.subr.bf16.mxu0 %v2327_v24  ;;  %v2471_v24 = vpack.c.bf16 %v831_v16, %v827_v15  ;;  %v858_v15 = vld [vmem:[#allocation5 + $0x550] sm:$0xff]  ;;  %v873_v29 = vld [vmem:[#allocation5 + $0x5c8] sm:$0xff] }
 0x1c2   :  { %v862_v16 = vld [vmem:[#allocation5 + $0x570] sm:$0xff] }
 0x1c3   :  { %2454 = vmatpush1.bf16.msra.mxu1 %v2453_v39  ;;  %v2475_v39 = vpack.c.bf16 %v839_v31, %v835_v30  ;;  %v877_v30 = vld [vmem:[#allocation5 + $0x5e8] sm:$0xff]  ;;  %v875_v31 = vld [vmem:[#allocation5 + $0x5d8] sm:$0xff] }
 0x1c4   :  { %2330 = vmatpush1.bf16.msra.mxu0 %v2329_v35  ;;  %2456 = vmatprep.subr.bf16.mxu1 %v2455_v40  ;;  %v832_v35 = vld [vmem:[#allocation5 + $0x480] sm:$0xff]  ;;  %v834_v40 = vld [vmem:[#allocation5 + $0x490] sm:$0xff] }
 0x1c5   :  { %2332 = vmatprep.subr.bf16.mxu0 %v2331_v36  ;;  %v836_v36 = vld [vmem:[#allocation5 + $0x4a0] sm:$0xff]  ;;  %v2477_v49 = vpack.c.bf16 %v838_v41, %v834_v40  ;;  %v874_v40 = vld [vmem:[#allocation5 + $0x5d0] sm:$0xff] }
 0x1c6   :  { %v2349_v48 = vpack.c.bf16 %v836_v36, %v832_v35  ;;  %v872_v36 = vld [vmem:[#allocation5 + $0x5c0] sm:$0xff]  ;;  %v878_v41 = vld [vmem:[#allocation5 + $0x5f0] sm:$0xff] }
 0x1c7   :  { %2458 = vmatpush1.bf16.msra.mxu1 %v2457_v46  ;;  %v847_v46 = vld [vmem:[#allocation5 + $0x4f8] sm:$0xff] }
 0x1c8   :  { %2334 = vmatpush1.bf16.msra.mxu0 %v2333_v45  ;;  %2460 = vmatprep.subr.bf16.mxu1 %v2459_v47  ;;  %v843_v45 = vld [vmem:[#allocation5 + $0x4d8] sm:$0xff] }
 0x1c9   :  { %2336 = vmatprep.subr.bf16.mxu0 %v2335_v54  ;;  %v2479_v53 = vpack.c.bf16 %v847_v46, %v843_v45  ;;  %v842_v54 = vld [vmem:[#allocation5 + $0x4d0] sm:$0xff]  ;;  %v887_v45 = vld [vmem:[#allocation5 + $0x638] sm:$0xff] }
 0x1ca   :  { %v2481_v61 = vpack.c.bf16 %v846_v55, %v842_v54  ;;  %v889_v54 = vld [vmem:[#allocation5 + $0x648] sm:$0xff] }
 0x1cb   :  { %2462 = vmatpush1.bf16.msra.mxu1 %v2461_v50  ;;  %v840_v50 = vld [vmem:[#allocation5 + $0x4c0] sm:$0xff]  ;;  %v893_v55 = vld [vmem:[#allocation5 + $0x668] sm:$0xff] }
 0x1cc   :  { %2464 = vmatprep.subr.bf16.mxu1 %v2463_v58  ;;  %2338 = vmatpush1.bf16.msra.mxu0 %v2337_v59  ;;  %v851_v58 = vld [vmem:[#allocation5 + $0x518] sm:$0xff]  ;;  %v2353_v60 = vpack.c.bf16 %v844_v51, %v840_v50  ;;  %v2499_v51 = vpack.c.bf16 %v887_v45, %v883_v44 }
 0x1cd   :  { %2340 = vmatprep.subr.bf16.mxu0 %v2339_v3  ;;  %v855_v59 = vld [vmem:[#allocation5 + $0x538] sm:$0xff]  ;;  %v850_v3 = vld [vmem:[#allocation5 + $0x510] sm:$0xff] }
 0x1ce   :  { %v2483_v2 = vpack.c.bf16 %v855_v59, %v851_v58  ;;  %v2485_v10 = vpack.c.bf16 %v854_v4, %v850_v3  ;;  %v897_v3 = vld [vmem:[#allocation5 + $0x688] sm:$0xff] }
 0x1cf   :  { %2466 = vmatpush1.bf16.msra.mxu1 %v2465_v62  ;;  %v848_v62 = vld [vmem:[#allocation5 + $0x500] sm:$0xff]  ;;  %v901_v4 = vld [vmem:[#allocation5 + $0x6a8] sm:$0xff] }
 0x1d0   :  { %2468 = vmatprep.subr.bf16.mxu1 %v2467_v5  ;;  %v857_v5 = vld [vmem:[#allocation5 + $0x548] sm:$0xff]  ;;  %v2357_v9 = vpack.c.bf16 %v852_v63, %v848_v62  ;;  %v2375_v62 = vpack.c.bf16 %v893_v55, %v889_v54  ;;  %v2503_v63 = vpack.c.bf16 %v895_v57, %v891_v56  ;;  %v931_v54 = vld [vmem:[#allocation5 + $0x798] sm:$0xff] }
 0x1d1   :  { %v935_v55 = vld [vmem:[#allocation5 + $0x7b8] sm:$0xff] }
 0x262   :  { %v600_v8 = vpop.f32.mrb[2].mxu0 }
 0x263   :  { %v680_v12 = vmul.f32 0.3, %v600_v8  ;;  %v602_v13 = vpop.f32.mrb[3].mxu0  ;;  %vm676_vm5 = vcmp.ge.f32.partialorder %v600_v8, 0.0 }
 0x264   :  { %vm677_vm6 = vcmp.ge.f32.partialorder %v602_v13, 0.0  ;;  %v681_v17 = vmul.f32 0.3, %v602_v13 }
 0x265   :  { %v684_v28 = vsel %vm676_vm5, %v600_v8, %v680_v12  ;;  %v3247_v32 = vpop.f32.mrb[2].mxu1  ;;  %v863_v8 = vld [vmem:[#allocation5 + $0x578] sm:$0xff]  ;;  %v860_v12 = vld [vmem:[#allocation5 + $0x560] sm:$0xff] }
 0x266   :  { %v685_v22 = vsel %vm677_vm6, %v602_v13, %v681_v17  ;;  %v673_v37 = vpop.f32.mrb[3].mxu1  ;;  %v2359_v13 = vpack.c.bf16 %v861_v6, %v857_v5  ;;  %v2487_v14 = vpack.c.bf16 %v863_v8, %v859_v7  ;;  %v865_v17 = vld [vmem:[#allocation5 + $0x588] sm:$0xff]  ;;  %v2361_v21 = vpack.c.bf16 %v860_v12, %v856_v11  ;;  %v899_v5 = vld [vmem:[#allocation5 + $0x698] sm:$0xff] }
 0x267   :  { %1030 = vmatprep.mubr.f32.mxu0 %v685_v22  ;;  %1172 = vmatprep.mubr.f32.mxu1 %v685_v22  ;;  %vm679_vm7 = vcmp.ge.f32.partialorder %v673_v37, 0.0  ;;  %v683_v43 = vmul.f32 0.3, %v673_v37  ;;  %v2489_v22 = vpack.c.bf16 %v862_v16, %v858_v15  ;;  %v903_v6 = vld [vmem:[#allocation5 + $0x6b8] sm:$0xff]  ;;  %v2379_v11 = vpack.c.bf16 %v901_v4, %v897_v3  ;;  %v905_v15 = vld [vmem:[#allocation5 + $0x6c8] sm:$0xff] }
 0x268   :  { %1031 = vmatmul.mubr.f32.vlgmr.msra.gmra.mrb[4].mxu0 %v684_v28  ;;  %1173 = vmatmul.mubr.f32.vlgmr.msra.gmra.mrb[4].mxu1 %v684_v28  ;;  %v870_v28 = vld [vmem:[#allocation5 + $0x5b0] sm:$0xff]  ;;  %v2507_v12 = vpack.c.bf16 %v903_v6, %v899_v5  ;;  %v909_v16 = vld [vmem:[#allocation5 + $0x6e8] sm:$0xff]  ;;  %v939_v3 = vld [vmem:[#allocation5 + $0x7d8] sm:$0xff]  ;;  %vm678_vm8 = vcmp.ge.f32.partialorder %v3247_v32, 0.0 }
 0x269   :  { %2342 = vmatpush1.bf16.msra.mxu0 %v2341_v18  ;;  %2470 = vmatpush1.bf16.msra.mxu1 %v2469_v19  ;;  %v687_v47 = vsel %vm679_vm7, %v673_v37, %v683_v43  ;;  %v869_v18 = vld [vmem:[#allocation5 + $0x5a8] sm:$0xff]  ;;  %v867_v19 = vld [vmem:[#allocation5 + $0x598] sm:$0xff]  ;;  %v2493_v35 = vpack.c.bf16 %v870_v28, %v866_v27  ;;  %v876_v37 = vld [vmem:[#allocation5 + $0x5e0] sm:$0xff] }
 0x26a   :  { %2344 = vmatprep.subr.bf16.mxu0 %v2343_v23  ;;  %2472 = vmatprep.subr.bf16.mxu1 %v2471_v24  ;;  %v864_v23 = vld [vmem:[#allocation5 + $0x580] sm:$0xff]  ;;  %v2363_v25 = vpack.c.bf16 %v869_v18, %v865_v17  ;;  %v2491_v26 = vpack.c.bf16 %v871_v20, %v867_v19  ;;  %v885_v43 = vld [vmem:[#allocation5 + $0x628] sm:$0xff]  ;;  %v2369_v46 = vpack.c.bf16 %v876_v37, %v872_v36  ;;  %v907_v17 = vld [vmem:[#allocation5 + $0x6d8] sm:$0xff] }
 0x26b   :  { %1101 = vmatprep.mubr.f32.mxu0 %v687_v47  ;;  %1243 = vmatprep.mubr.f32.mxu1 %v687_v47  ;;  %v868_v24 = vld [vmem:[#allocation5 + $0x5a0] sm:$0xff]  ;;  %v2497_v47 = vpack.c.bf16 %v878_v41, %v874_v40  ;;  %v2371_v50 = vpack.c.bf16 %v885_v43, %v881_v42  ;;  %v911_v18 = vld [vmem:[#allocation5 + $0x6f8] sm:$0xff]  ;;  %v913_v27 = vld [vmem:[#allocation5 + $0x708] sm:$0xff] }
 0x26c   :  { %v917_v28 = vld [vmem:[#allocation5 + $0x728] sm:$0xff]  ;;  %v923_v42 = vld [vmem:[#allocation5 + $0x758] sm:$0xff] }
 0x26d   :  { %2346 = vmatpush1.bf16.msra.mxu0 %v2345_v33  ;;  %2474 = vmatpush1.bf16.msra.mxu1 %v2473_v34  ;;  %v879_v33 = vld [vmem:[#allocation5 + $0x5f8] sm:$0xff]  ;;  %v2365_v34 = vpack.c.bf16 %v868_v24, %v864_v23  ;;  %v2383_v23 = vpack.c.bf16 %v909_v16, %v905_v15  ;;  %v2511_v24 = vpack.c.bf16 %v911_v18, %v907_v17  ;;  %v921_v40 = vld [vmem:[#allocation5 + $0x748] sm:$0xff] }
 0x26e   :  { %2348 = vmatprep.subr.bf16.mxu0 %v2347_v38  ;;  %2476 = vmatprep.subr.bf16.mxu1 %v2475_v39  ;;  %v2367_v38 = vpack.c.bf16 %v877_v30, %v873_v29  ;;  %v2495_v39 = vpack.c.bf16 %v879_v33, %v875_v31  ;;  %v915_v29 = vld [vmem:[#allocation5 + $0x718] sm:$0xff]  ;;  %v2387_v36 = vpack.c.bf16 %v917_v28, %v913_v27  ;;  %v925_v41 = vld [vmem:[#allocation5 + $0x768] sm:$0xff] }
 0x26f   :  { %v919_v30 = vld [vmem:[#allocation5 + $0x738] sm:$0xff]  ;;  %v1310_v15 = vld [vmem:[#allocation8 + $0x180] sm:$0xff]  ;;  %v1311_v16 = vld [vmem:[#allocation8 + $0x188] sm:$0xff] }
 0x270   :  { %v2515_v37 = vpack.c.bf16 %v919_v30, %v915_v29  ;;  %v927_v43 = vld [vmem:[#allocation5 + $0x778] sm:$0xff] }
 0x271   :  { %2350 = vmatpush1.bf16.msra.mxu0 %v2349_v48  ;;  %2478 = vmatpush1.bf16.msra.mxu1 %v2477_v49  ;;  %v880_v48 = vld [vmem:[#allocation5 + $0x600] sm:$0xff]  ;;  %v943_v4 = vld [vmem:[#allocation5 + $0x7f8] sm:$0xff] }
 0x272   :  { %2352 = vmatprep.subr.bf16.mxu0 %v2351_v52  ;;  %2480 = vmatprep.subr.bf16.mxu1 %v2479_v53  ;;  %v884_v49 = vld [vmem:[#allocation5 + $0x620] sm:$0xff]  ;;  %v882_v52 = vld [vmem:[#allocation5 + $0x610] sm:$0xff] }
 0x273   :  { %v886_v53 = vld [vmem:[#allocation5 + $0x630] sm:$0xff]  ;;  %v2373_v58 = vpack.c.bf16 %v884_v49, %v880_v48  ;;  %v2391_v48 = vpack.c.bf16 %v925_v41, %v921_v40  ;;  %v2519_v49 = vpack.c.bf16 %v927_v43, %v923_v42  ;;  %v1281_v27 = vld [vmem:[#allocation8 + $0x98] sm:$0xff]  ;;  %v1314_v42 = vld [vmem:[#allocation8 + $0x1a0] sm:$0xff] }
 0x274   :  { %v2501_v59 = vpack.c.bf16 %v886_v53, %v882_v52  ;;  %v929_v52 = vld [vmem:[#allocation5 + $0x788] sm:$0xff]  ;;  %v1312_v28 = vld [vmem:[#allocation8 + $0x190] sm:$0xff]  ;;  %v1313_v29 = vld [vmem:[#allocation8 + $0x198] sm:$0xff] }
 0x275   :  { %2354 = vmatpush1.bf16.msra.mxu0 %v2353_v60  ;;  %2482 = vmatpush1.bf16.msra.mxu1 %v2481_v61  ;;  %v888_v60 = vld [vmem:[#allocation5 + $0x640] sm:$0xff]  ;;  %v933_v53 = vld [vmem:[#allocation5 + $0x7a8] sm:$0xff] }
 0x276   :  { %2356 = vmatprep.subr.bf16.mxu0 %v2355_v1  ;;  %2484 = vmatprep.subr.bf16.mxu1 %v2483_v2  ;;  %v892_v61 = vld [vmem:[#allocation5 + $0x660] sm:$0xff]  ;;  %v890_v1 = vld [vmem:[#allocation5 + $0x650] sm:$0xff] }
 0x277   :  { %v894_v2 = vld [vmem:[#allocation5 + $0x670] sm:$0xff]  ;;  %v2377_v7 = vpack.c.bf16 %v892_v61, %v888_v60  ;;  %v2395_v60 = vpack.c.bf16 %v933_v53, %v929_v52  ;;  %v2523_v61 = vpack.c.bf16 %v935_v55, %v931_v54  ;;  %v1285_v53 = vld [vmem:[#allocation8 + $0xb8] sm:$0xff] }
 0x278   :  { %v2505_v8 = vpack.c.bf16 %v894_v2, %v890_v1  ;;  %v937_v1 = vld [vmem:[#allocation5 + $0x7c8] sm:$0xff]  ;;  %v1284_v52 = vld [vmem:[#allocation8 + $0xb0] sm:$0xff]  ;;  %v1317_v54 = vld [vmem:[#allocation8 + $0x1b8] sm:$0xff] }
 0x279   :  { %2358 = vmatpush1.bf16.msra.mxu0 %v2357_v9  ;;  %2486 = vmatpush1.bf16.msra.mxu1 %v2485_v10  ;;  %v896_v9 = vld [vmem:[#allocation5 + $0x680] sm:$0xff]  ;;  %v941_v2 = vld [vmem:[#allocation5 + $0x7e8] sm:$0xff] }
 0x27a   :  { %2360 = vmatprep.subr.bf16.mxu0 %v2359_v13  ;;  %2488 = vmatprep.subr.bf16.mxu1 %v2487_v14  ;;  %v900_v10 = vld [vmem:[#allocation5 + $0x6a0] sm:$0xff]  ;;  %v898_v13 = vld [vmem:[#allocation5 + $0x690] sm:$0xff] }
 0x27b   :  { %v902_v14 = vld [vmem:[#allocation5 + $0x6b0] sm:$0xff]  ;;  %v2381_v19 = vpack.c.bf16 %v900_v10, %v896_v9  ;;  %v2399_v9 = vpack.c.bf16 %v941_v2, %v937_v1  ;;  %v2527_v10 = vpack.c.bf16 %v943_v4, %v939_v3  ;;  %v1318_v2 = vld [vmem:[#allocation8 + $0x1c0] sm:$0xff] }
 0x27c   :  { %v2509_v20 = vpack.c.bf16 %v902_v14, %v898_v13  ;;  %v1278_v13 = vld [vmem:[#allocation8 + $0x80] sm:$0xff]  ;;  %v1279_v14 = vld [vmem:[#allocation8 + $0x88] sm:$0xff] }
 0x27d   :  { %2362 = vmatpush1.bf16.msra.mxu0 %v2361_v21  ;;  %2490 = vmatpush1.bf16.msra.mxu1 %v2489_v22  ;;  %v904_v21 = vld [vmem:[#allocation5 + $0x6c0] sm:$0xff]  ;;  %v1283_v41 = vld [vmem:[#allocation8 + $0xa8] sm:$0xff] }
 0x27e   :  { %2364 = vmatprep.subr.bf16.mxu0 %v2363_v25  ;;  %2492 = vmatprep.subr.bf16.mxu1 %v2491_v26  ;;  %v908_v22 = vld [vmem:[#allocation5 + $0x6e0] sm:$0xff]  ;;  %v906_v25 = vld [vmem:[#allocation5 + $0x6d0] sm:$0xff] }
 0x27f   :  { %v910_v26 = vld [vmem:[#allocation5 + $0x6f0] sm:$0xff]  ;;  %v2385_v31 = vpack.c.bf16 %v908_v22, %v904_v21  ;;  %v2531_v21 = vpack.c.bf16 %v1279_v14, %v1278_v13  ;;  %v2563_v22 = vpack.c.bf16 %v1311_v16, %v1310_v15  ;;  %v1289_v13 = vld [vmem:[#allocation8 + $0xd8] sm:$0xff] }
 0x280   :  { %v2513_v33 = vpack.c.bf16 %v910_v26, %v906_v25  ;;  %v1280_v25 = vld [vmem:[#allocation8 + $0x90] sm:$0xff]  ;;  %v682_v26 = vmul.f32 0.3, %v3247_v32  ;;  %v1315_v43 = vld [vmem:[#allocation8 + $0x1a8] sm:$0xff]  ;;  %v1321_v15 = vld [vmem:[#allocation8 + $0x1d8] sm:$0xff] }
 0x281   :  { %2366 = vmatpush1.bf16.msra.mxu0 %v2365_v34  ;;  %2494 = vmatpush1.bf16.msra.mxu1 %v2493_v35  ;;  %v912_v34 = vld [vmem:[#allocation5 + $0x700] sm:$0xff]  ;;  %v1287_v1 = vld [vmem:[#allocation8 + $0xc8] sm:$0xff]  ;;  %v1320_v14 = vld [vmem:[#allocation8 + $0x1d0] sm:$0xff] }
 0x282   :  { %2368 = vmatprep.subr.bf16.mxu0 %v2367_v38  ;;  %2496 = vmatprep.subr.bf16.mxu1 %v2495_v39  ;;  %v916_v35 = vld [vmem:[#allocation5 + $0x720] sm:$0xff]  ;;  %v914_v38 = vld [vmem:[#allocation5 + $0x710] sm:$0xff]  ;;  %v686_v40 = vsel %vm678_vm8, %v3247_v32, %v682_v26 }
 0x283   :  { %v918_v39 = vld [vmem:[#allocation5 + $0x730] sm:$0xff]  ;;  %v2389_v44 = vpack.c.bf16 %v916_v35, %v912_v34  ;;  %v1265_v34 = vld [vmem:[#allocation8 + $0x18] sm:$0xff]  ;;  %v2535_v35 = vpack.c.bf16 %v1281_v27, %v1280_v25  ;;  %v1290_v26 = vld [vmem:[#allocation8 + $0xe0] sm:$0xff] }
 0x284   :  { %v2517_v45 = vpack.c.bf16 %v918_v39, %v914_v38  ;;  %v1297_v38 = vld [vmem:[#allocation8 + $0x118] sm:$0xff]  ;;  %v1282_v39 = vld [vmem:[#allocation8 + $0xa0] sm:$0xff]  ;;  %v1316_v32 = vld [vmem:[#allocation8 + $0x1b0] sm:$0xff] }
 0x285   :  { %2370 = vmatpush1.bf16.msra.mxu0 %v2369_v46  ;;  %2498 = vmatpush1.bf16.msra.mxu1 %v2497_v47  ;;  %v920_v46 = vld [vmem:[#allocation5 + $0x740] sm:$0xff]  ;;  %v1319_v3 = vld [vmem:[#allocation8 + $0x1c8] sm:$0xff] }
 0x286   :  { %2372 = vmatprep.subr.bf16.mxu0 %v2371_v50  ;;  %2500 = vmatprep.subr.bf16.mxu1 %v2499_v51  ;;  %v924_v47 = vld [vmem:[#allocation5 + $0x760] sm:$0xff]  ;;  %v922_v50 = vld [vmem:[#allocation5 + $0x750] sm:$0xff] }
 0x287   :  { %v926_v51 = vld [vmem:[#allocation5 + $0x770] sm:$0xff]  ;;  %v2393_v56 = vpack.c.bf16 %v924_v47, %v920_v46  ;;  %v1266_v46 = vld [vmem:[#allocation8 + $0x20] sm:$0xff] }
 0x288   :  { %v2521_v57 = vpack.c.bf16 %v926_v51, %v922_v50  ;;  %v1267_v47 = vld [vmem:[#allocation8 + $0x28] sm:$0xff]  ;;  %v1298_v50 = vld [vmem:[#allocation8 + $0x120] sm:$0xff] }
 0x289   :  { %2374 = vmatpush1.bf16.msra.mxu0 %v2373_v58  ;;  %2502 = vmatpush1.bf16.msra.mxu1 %v2501_v59  ;;  %v928_v58 = vld [vmem:[#allocation5 + $0x780] sm:$0xff]  ;;  %v1299_v51 = vld [vmem:[#allocation8 + $0x128] sm:$0xff]  ;;  %v2541_v55 = vpack.c.bf16 %v1267_v47, %v1266_v46 }
 0x28a   :  { %2376 = vmatprep.subr.bf16.mxu0 %v2375_v62  ;;  %2504 = vmatprep.subr.bf16.mxu1 %v2503_v63  ;;  %v932_v59 = vld [vmem:[#allocation5 + $0x7a0] sm:$0xff]  ;;  %v930_v62 = vld [vmem:[#allocation5 + $0x790] sm:$0xff] }
 0x28b   :  { %v934_v63 = vld [vmem:[#allocation5 + $0x7b0] sm:$0xff]  ;;  %v2397_v5 = vpack.c.bf16 %v932_v59, %v928_v58  ;;  %v1269_v58 = vld [vmem:[#allocation8 + $0x38] sm:$0xff]  ;;  %v2543_v59 = vpack.c.bf16 %v1285_v53, %v1284_v52  ;;  %v946_v52 = vlaneseq }
 0x28c   :  { %v2525_v6 = vpack.c.bf16 %v934_v63, %v930_v62  ;;  %v1301_v62 = vld [vmem:[#allocation8 + $0x138] sm:$0xff]  ;;  %v1286_v63 = vld [vmem:[#allocation8 + $0xc0] sm:$0xff]  ;;  %v1291_v27 = vld [vmem:[#allocation8 + $0xe8] sm:$0xff] }
 0x28d   :  { %2378 = vmatpush1.bf16.msra.mxu0 %v2377_v7  ;;  %2506 = vmatpush1.bf16.msra.mxu1 %v2505_v8  ;;  %v936_v7 = vld [vmem:[#allocation5 + $0x7c0] sm:$0xff]  ;;  %v947_v53 = vshrl.u32 %v946_v52, 7  ;;  %v1643_v52 = vld [vmem:[#allocation13 + $0x30] sm:$0xff] }
 0x28e   :  { %2380 = vmatprep.subr.bf16.mxu0 %v2379_v11  ;;  %2508 = vmatprep.subr.bf16.mxu1 %v2507_v12  ;;  %v940_v8 = vld [vmem:[#allocation5 + $0x7e0] sm:$0xff]  ;;  %v938_v11 = vld [vmem:[#allocation5 + $0x7d0] sm:$0xff] }
 0x28f   :  { %v942_v12 = vld [vmem:[#allocation5 + $0x7f0] sm:$0xff]  ;;  %v2401_v17 = vpack.c.bf16 %v940_v8, %v936_v7  ;;  %v2547_v8 = vpack.c.bf16 %v1287_v1, %v1286_v63 }
 0x290   :  { %v2529_v18 = vpack.c.bf16 %v942_v12, %v938_v11  ;;  %v1271_v7 = vld [vmem:[#allocation8 + $0x48] sm:$0xff]  ;;  %v1288_v12 = vld [vmem:[#allocation8 + $0xd0] sm:$0xff] }
 0x291   :  { %2382 = vmatpush1.bf16.msra.mxu0 %v2381_v19  ;;  %2510 = vmatpush1.bf16.msra.mxu1 %v2509_v20  ;;  %v1262_v19 = vld [vmem:[#allocation8] sm:$0xff]  ;;  %v1263_v20 = vld [vmem:[#allocation8 + $0x8] sm:$0xff] }
 0x292   :  { %2384 = vmatprep.subr.bf16.mxu0 %v2383_v23  ;;  %2512 = vmatprep.subr.bf16.mxu1 %v2511_v24  ;;  %v1294_v23 = vld [vmem:[#allocation8 + $0x100] sm:$0xff]  ;;  %v1295_v24 = vld [vmem:[#allocation8 + $0x108] sm:$0xff]  ;;  %v2533_v30 = vpack.c.bf16 %v1263_v20, %v1262_v19  ;;  %v2551_v19 = vpack.c.bf16 %v1289_v13, %v1288_v12  ;;  %v2583_v20 = vpack.c.bf16 %v1321_v15, %v1320_v14 }
 0x293   :  { %v1303_v11 = vld [vmem:[#allocation8 + $0x148] sm:$0xff]  ;;  %v1492_v13 = vld [vmem:[#allocation11] sm:$0xf] }
 0x294   :  { %v1476_v14 = vld [vmem:[#allocation10] sm:$0xff]  ;;  %v1477_v15 = vld [vmem:[#allocation10 + $0x8] sm:$0xff] }
 0x295   :  { %2386 = vmatpush1.bf16.msra.mxu0 %v2385_v31  ;;  %2514 = vmatpush1.bf16.msra.mxu1 %v2513_v33  ;;  %v2565_v31 = vpack.c.bf16 %v1295_v24, %v1294_v23  ;;  %v1264_v33 = vld [vmem:[#allocation8 + $0x10] sm:$0xff]  ;;  %v1305_v23 = vld [vmem:[#allocation8 + $0x158] sm:$0xff] }
 0x296   :  { %2388 = vmatprep.subr.bf16.mxu0 %v2387_v36  ;;  %2516 = vmatprep.subr.bf16.mxu1 %v2515_v37  ;;  %v2567_v36 = vpack.c.bf16 %v1313_v29, %v1312_v28  ;;  %v1296_v37 = vld [vmem:[#allocation8 + $0x110] sm:$0xff]  ;;  %v1322_v28 = vld [vmem:[#allocation8 + $0x1e0] sm:$0xff]  ;;  %v2555_v29 = vpack.c.bf16 %v1291_v27, %v1290_v26  ;;  %v1483_v27 = vld [vmem:[#allocation10 + $0x38] sm:$0xff] }
 0x297   :  { %v1482_v26 = vld [vmem:[#allocation10 + $0x30] sm:$0xff] }
 0x299   :  { %2390 = vmatpush1.bf16.msra.mxu0 %v2389_v44  ;;  %2518 = vmatpush1.bf16.msra.mxu1 %v2517_v45  ;;  %v2537_v44 = vpack.c.bf16 %v1265_v34, %v1264_v33  ;;  %v2569_v45 = vpack.c.bf16 %v1297_v38, %v1296_v37  ;;  %v1275_v33 = vld [vmem:[#allocation8 + $0x68] sm:$0xff] }
 0x29a   :  { %2392 = vmatprep.subr.bf16.mxu0 %v2391_v48  ;;  %2520 = vmatprep.subr.bf16.mxu1 %v2519_v49  ;;  %v2539_v48 = vpack.c.bf16 %v1283_v41, %v1282_v39  ;;  %v2571_v49 = vpack.c.bf16 %v1315_v43, %v1314_v42  ;;  %v1307_v37 = vld [vmem:[#allocation8 + $0x168] sm:$0xff]  ;;  %v1292_v39 = vld [vmem:[#allocation8 + $0xf0] sm:$0xff]  ;;  %v1325_v43 = vld [vmem:[#allocation8 + $0x1f8] sm:$0xff] }
 0x29b   :  { %v1324_v41 = vld [vmem:[#allocation8 + $0x1f0] sm:$0xff] }
 0x29c   :  { %v2591_v46 = vpack.c.bf16 %v1325_v43, %v1324_v41  ;;  %v1638_v43 = vld [vmem:[#allocation13 + $0x8] sm:$0xff] }
 0x29d   :  { %2394 = vmatpush1.bf16.msra.mxu0 %v2393_v56  ;;  %2522 = vmatpush1.bf16.msra.mxu1 %v2521_v57  ;;  %v2573_v56 = vpack.c.bf16 %v1299_v51, %v1298_v50  ;;  %v1268_v57 = vld [vmem:[#allocation8 + $0x30] sm:$0xff]  ;;  %v2971_v51 = vmov 0.0|0.0  }
 0x29e   :  { %2396 = vmatprep.subr.bf16.mxu0 %v2395_v60  ;;  %2524 = vmatprep.subr.bf16.mxu1 %v2523_v61  ;;  %v2575_v60 = vpack.c.bf16 %v1317_v54, %v1316_v32  ;;  %v1300_v61 = vld [vmem:[#allocation8 + $0x130] sm:$0xff]  ;;  %v2545_v4 = vpack.c.bf16 %v1269_v58, %v1268_v57  ;;  %v948_v32 = vsub.s32 0, %v947_v53  ;;  %v956_v54 = vsub.s32 2, %v947_v53 }
 0x29f   :  { %v960_v57 = vsub.s32 3, %v947_v53 }
 0x2a1   :  { %2398 = vmatpush1.bf16.msra.mxu0 %v2397_v5  ;;  %2526 = vmatpush1.bf16.msra.mxu1 %v2525_v6  ;;  %v2577_v5 = vpack.c.bf16 %v1301_v62, %v1300_v61  ;;  %v1270_v6 = vld [vmem:[#allocation8 + $0x40] sm:$0xff] }
 0x2a2   :  { %2400 = vmatprep.subr.bf16.mxu0 %v2399_v9  ;;  %2528 = vmatprep.subr.bf16.mxu1 %v2527_v10  ;;  %v2579_v9 = vpack.c.bf16 %v1319_v3, %v1318_v2  ;;  %v1302_v10 = vld [vmem:[#allocation8 + $0x140] sm:$0xff]  ;;  %v2549_v16 = vpack.c.bf16 %v1271_v7, %v1270_v6 }
 0x2a5   :  { %2402 = vmatpush1.bf16.msra.mxu0 %v2401_v17  ;;  %2530 = vmatpush1.bf16.msra.mxu1 %v2529_v18  ;;  %v2581_v17 = vpack.c.bf16 %v1303_v11, %v1302_v10  ;;  %v1272_v18 = vld [vmem:[#allocation8 + $0x50] sm:$0xff] }
 0x2a6   :  { %2532 = vmatprep.subr.bf16.mxu0 %v2531_v21  ;;  %2564 = vmatprep.subr.bf16.mxu1 %v2563_v22  ;;  %v1273_v21 = vld [vmem:[#allocation8 + $0x58] sm:$0xff]  ;;  %v1304_v22 = vld [vmem:[#allocation8 + $0x150] sm:$0xff] }
 0x2a7   :  { %v2553_v24 = vpack.c.bf16 %v1273_v21, %v1272_v18  ;;  %v2585_v25 = vpack.c.bf16 %v1305_v23, %v1304_v22  ;;  %v2596_v18 = vpack.c.bf16 %v1477_v15, %v1476_v14  ;;  %v2724_v21 = vld [vmem:[%s3326_s2] sm:$0xff]  ;;  %v1480_v23 = vld [vmem:[#allocation10 + $0x20] sm:$0xff] }
 0x2a8   :  { %1102 = vmatmul.mubr.f32.vlgmr.msra.gmra.mrb[4].mxu0 %v686_v40  ;;  %1244 = vmatmul.mubr.f32.vlgmr.msra.gmra.mrb[4].mxu1 %v686_v40  ;;  %v1293_v40 = vld [vmem:[#allocation8 + $0xf8] sm:$0xff]  ;;  %v1731_v14 = vld [vmem:[#allocation14] sm:$0xff]  ;;  %v1732_v15 = vld [vmem:[#allocation14 + $0x8] sm:$0xff] }
 0x2a9   :  { %2534 = vmatpush3.bf16.msra.mxu0 %v2533_v30  ;;  %2566 = vmatpush3.bf16.msra.mxu1 %v2565_v31  ;;  %v1323_v30 = vld [vmem:[#allocation8 + $0x1e8] sm:$0xff]  ;;  %v1274_v31 = vld [vmem:[#allocation8 + $0x60] sm:$0xff]  ;;  %v2559_v42 = vpack.c.bf16 %v1293_v40, %v1292_v39  ;;  %v1490_v39 = vld [vmem:[#allocation10 + $0x70] sm:$0xff] }
 0x2aa   :  { %2536 = vmatprep.subr.bf16.mxu0 %v2535_v35  ;;  %2568 = vmatprep.subr.bf16.mxu1 %v2567_v36  ;;  %v2587_v34 = vpack.c.bf16 %v1323_v30, %v1322_v28  ;;  %v2557_v35 = vpack.c.bf16 %v1275_v33, %v1274_v31  ;;  %v1306_v36 = vld [vmem:[#allocation8 + $0x160] sm:$0xff]  ;;  %v2605_v28 = vpack.c.bf16 %v1483_v27, %v1482_v26  ;;  %v1485_v30 = vld [vmem:[#allocation10 + $0x48] sm:$0xff]  ;;  %v1486_v33 = vld [vmem:[#allocation10 + $0x50] sm:$0xff] }
 0x2ab   :  { %v2589_v38 = vpack.c.bf16 %v1307_v37, %v1306_v36  ;;  %v1488_v36 = vld [vmem:[#allocation10 + $0x60] sm:$0xff]  ;;  %v1489_v37 = vld [vmem:[#allocation10 + $0x68] sm:$0xff]  ;;  %v1491_v40 = vld [vmem:[#allocation10 + $0x78] sm:$0xff] }
 0x2ac   :  { %v2617_v41 = vpack.c.bf16 %v1491_v40, %v1490_v39  ;;  %v1737_v26 = vld [vmem:[#allocation14 + $0x30] sm:$0xff]  ;;  %v1738_v27 = vld [vmem:[#allocation14 + $0x38] sm:$0xff] }
 0x2ad   :  { %2538 = vmatpush3.bf16.msra.mxu0 %v2537_v44  ;;  %2570 = vmatpush3.bf16.msra.mxu1 %v2569_v45  ;;  %v1276_v44 = vld [vmem:[#allocation8 + $0x70] sm:$0xff]  ;;  %v1277_v45 = vld [vmem:[#allocation8 + $0x78] sm:$0xff] }
 0x2ae   :  { %2540 = vmatprep.subr.bf16.mxu0 %v2539_v48  ;;  %2572 = vmatprep.subr.bf16.mxu1 %v2571_v49  ;;  %v2561_v47 = vpack.c.bf16 %v1277_v45, %v1276_v44  ;;  %v1308_v48 = vld [vmem:[#allocation8 + $0x170] sm:$0xff]  ;;  %v1309_v49 = vld [vmem:[#allocation8 + $0x178] sm:$0xff] }
 0x2af   :  { %v2593_v50 = vpack.c.bf16 %v1309_v49, %v1308_v48  ;;  %v1639_v44 = vld [vmem:[#allocation13 + $0x10] sm:$0xff]  ;;  %v1641_v48 = vld [vmem:[#allocation13 + $0x20] sm:$0xff]  ;;  %v1642_v49 = vld [vmem:[#allocation13 + $0x28] sm:$0xff] }
 0x2b0   :  { %v1746_v39 = vld [vmem:[#allocation14 + $0x78] sm:$0xff] }
 0x2b1   :  { %2542 = vmatpush3.bf16.msra.mxu0 %v2541_v55  ;;  %2574 = vmatpush3.bf16.msra.mxu1 %v2573_v56  ;;  %v944_v55 = vld [vmem:[#allocation7] sm:$0xf]  ;;  %v952_v56 = vsub.s32 1, %v947_v53 }
 0x2b2   :  { %2544 = vmatprep.subr.bf16.mxu0 %v2543_v59  ;;  %2576 = vmatprep.subr.bf16.mxu1 %v2575_v60  ;;  %v949_v58 = vrot.slane %v944_v55, %v948_v32  ;;  %v957_v59 = vrot.slane %v944_v55, %v956_v54  ;;  %v961_v61 = vrot.slane %v944_v55, %v960_v57  ;;  %v1644_v53 = vld [vmem:[#allocation13 + $0x38] sm:$0xff]  ;;  %v1645_v54 = vld [vmem:[#allocation13 + $0x40] sm:$0xff]  ;;  %v1647_v57 = vld [vmem:[#allocation13 + $0x50] sm:$0xff] }
 0x2b3   :  { %v953_v60 = vrot.slane %v944_v55, %v952_v56  ;;  %v2629_v32 = vpack.c.bf16 %v1644_v53, %v1643_v52  ;;  %v1646_v55 = vld [vmem:[#allocation13 + $0x48] sm:$0xff]  ;;  %v1832_v52 = vld [vmem:[#allocation16 + $0x38] sm:$0xff] }
 0x2b4   :  { %v2632_v56 = vpack.c.bf16 %v1646_v55, %v1645_v54  ;;  %v1834_v54 = vld [vmem:[#allocation16 + $0x48] sm:$0xff] }
 0x2b5   :  { %2546 = vmatpush3.bf16.msra.mxu0 %v2545_v4  ;;  %2578 = vmatpush3.bf16.msra.mxu1 %v2577_v5 }
 0x2b6   :  { %2548 = vmatprep.subr.bf16.mxu0 %v2547_v8  ;;  %2580 = vmatprep.subr.bf16.mxu1 %v2579_v9 }
 0x2b9   :  { %2550 = vmatpush3.bf16.msra.mxu0 %v2549_v16  ;;  %2582 = vmatpush3.bf16.msra.mxu1 %v2581_v17 }
 0x2ba   :  { %2552 = vmatprep.subr.bf16.mxu0 %v2551_v19  ;;  %2584 = vmatprep.subr.bf16.mxu1 %v2583_v20  ;;  %v1478_v19 = vld [vmem:[#allocation10 + $0x10] sm:$0xff]  ;;  %v1479_v20 = vld [vmem:[#allocation10 + $0x18] sm:$0xff] }
 0x2bb   :  { %v2599_v22 = vpack.c.bf16 %v1479_v20, %v1478_v19  ;;  %v1733_v20 = vld [vmem:[#allocation14 + $0x10] sm:$0xff] }
 0x2bd   :  { %2554 = vmatpush3.bf16.msra.mxu0 %v2553_v24  ;;  %2586 = vmatpush3.bf16.msra.mxu1 %v2585_v25  ;;  %v1481_v24 = vld [vmem:[#allocation10 + $0x28] sm:$0xff] }
 0x2be   :  { %2556 = vmatprep.subr.bf16.mxu0 %v2555_v29  ;;  %2588 = vmatprep.subr.bf16.mxu1 %v2587_v34  ;;  %v2602_v25 = vpack.c.bf16 %v1481_v24, %v1480_v23  ;;  %v1484_v29 = vld [vmem:[#allocation10 + $0x40] sm:$0xff]  ;;  %v1487_v34 = vld [vmem:[#allocation10 + $0x58] sm:$0xff]  ;;  %v1736_v24 = vld [vmem:[#allocation14 + $0x28] sm:$0xff] }
 0x2bf   :  { %v2608_v31 = vpack.c.bf16 %v1485_v30, %v1484_v29  ;;  %v1735_v23 = vld [vmem:[#allocation14 + $0x20] sm:$0xff]  ;;  %v1740_v30 = vld [vmem:[#allocation14 + $0x48] sm:$0xff] }
 0x2c0   :  { %v1739_v29 = vld [vmem:[#allocation14 + $0x40] sm:$0xff] }
 0x2c1   :  { %2558 = vmatpush3.bf16.msra.mxu0 %v2557_v35  ;;  %2590 = vmatpush3.bf16.msra.mxu1 %v2589_v38  ;;  %v2611_v35 = vpack.c.bf16 %v1487_v34, %v1486_v33  ;;  %v2614_v38 = vpack.c.bf16 %v1489_v37, %v1488_v36  ;;  %v1742_v33 = vld [vmem:[#allocation14 + $0x58] sm:$0xff]  ;;  %v1744_v36 = vld [vmem:[#allocation14 + $0x68] sm:$0xff] }
 0x2c2   :  { %2560 = vmatprep.subr.bf16.mxu0 %v2559_v42  ;;  %2592 = vmatprep.subr.bf16.mxu1 %v2591_v46  ;;  %v1637_v42 = vld [vmem:[#allocation13] sm:$0xff]  ;;  %v1640_v46 = vld [vmem:[#allocation13 + $0x18] sm:$0xff] }
 0x2c3   :  { %v2620_v45 = vpack.c.bf16 %v1638_v43, %v1637_v42  ;;  %v1826_v42 = vld [vmem:[#allocation16 + $0x8] sm:$0xff]  ;;  %v1827_v43 = vld [vmem:[#allocation16 + $0x10] sm:$0xff] }
 0x2c5   :  { %2562 = vmatpush3.bf16.msra.mxu0 %v2561_v47  ;;  %2594 = vmatpush3.bf16.msra.mxu1 %v2593_v50  ;;  %v2623_v47 = vpack.c.bf16 %v1640_v46, %v1639_v44  ;;  %v2626_v50 = vpack.c.bf16 %v1642_v49, %v1641_v48  ;;  %v1830_v48 = vld [vmem:[#allocation16 + $0x28] sm:$0xff] }
 0x2c6   :  { %2098 = vmatprep.subr.mxu0 %v2970_v0  ;;  %2619 = vmatprep.subr.bf16.mxu1 %v2971_v51 }
 0x37b   :  { %v1103_v62 = vpop.f32.mrb[4].mxu0  ;;  %v1245_v63 = vpop.f32.mrb[4].mxu1 }
 0x37c   :  { %v2691_v1 = vadd.f32 %v1103_v62, %v949_v58  ;;  %v2693_v2 = vadd.f32 %v1245_v63, %v957_v59  ;;  %v1105_v3 = vpop.f32.mrb[5].mxu0  ;;  %v1247_v4 = vpop.f32.mrb[5].mxu1  ;;  %v1648_v58 = vld [vmem:[#allocation13 + $0x58] sm:$0xff] }
 0x37d   :  { %v2692_v5 = vadd.f32 %v1105_v3, %v953_v60  ;;  %v2694_v6 = vadd.f32 %v1247_v4, %v961_v61  ;;  %v2635_v59 = vpack.c.bf16 %v1648_v58, %v1647_v57  ;;  %v1649_v60 = vld [vmem:[#allocation13 + $0x60] sm:$0xff]  ;;  %v1650_v61 = vld [vmem:[#allocation13 + $0x68] sm:$0xff]  ;;  %v1836_v57 = vld [vmem:[#allocation16 + $0x58] sm:$0xff] }
 0x37e   :  { %vm1250_vm9 = vcmp.ge.f32.partialorder %v2691_v1, 0.0  ;;  %v1254_v7 = vmul.f32 0.3, %v2691_v1  ;;  %vm1252_vm10 = vcmp.ge.f32.partialorder %v2693_v2, 0.0  ;;  %v1256_v8 = vmul.f32 0.3, %v2693_v2 }
 0x37f   :  { %v1255_v9 = vmul.f32 0.3, %v2692_v5  ;;  %v1257_v10 = vmul.f32 0.3, %v2694_v6  ;;  %vm1251_vm11 = vcmp.ge.f32.partialorder %v2692_v5, 0.0  ;;  %vm1253_vm12 = vcmp.ge.f32.partialorder %v2694_v6, 0.0 }
 0x380   :  { %v1258_v16 = vsel %vm1250_vm9, %v2691_v1, %v1254_v7  ;;  %v1260_v17 = vsel %vm1252_vm10, %v2693_v2, %v1256_v8  ;;  %v2638_v62 = vpack.c.bf16 %v1650_v61, %v1649_v60  ;;  %v1952_v2 = vld [vmem:[%s3332_s8] ss:$0 sm:$0xff] }
 0x381   :  { %v1259_v11 = vsel %vm1251_vm11, %v2692_v5, %v1255_v9  ;;  %v1261_v12 = vsel %vm1253_vm12, %v2694_v6, %v1257_v10  ;;  %v1838_v60 = vld [vmem:[#allocation16 + $0x68] sm:$0xff] }
 0x382   :  { %1397 = vmatprep.mubr.f32.mxu0 %v1259_v11  ;;  %1467 = vmatprep.mubr.f32.mxu1 %v1261_v12  ;;  %v1651_v11 = vld [vmem:[#allocation13 + $0x70] sm:$0xff]  ;;  %v1652_v12 = vld [vmem:[#allocation13 + $0x78] sm:$0xff] }
 0x383   :  { %1398 = vmatmul.mubr.f32.vlgmr.msra.gmra.mrb[6].mxu0 %v1258_v16  ;;  %1468 = vmatmul.mubr.f32.vlgmr.msra.gmra.mrb[6].mxu1 %v1260_v17  ;;  %v2644_v17 = vpack.c.bf16 %v1732_v15, %v1731_v14 }
 0x384   :  { %2099 = vmatpush3.msk.msra.mxu0 %vm366_vm0, %v1492_v13  ;;  %2100 = vmatprep.mubr.msk.f32.mxu0 %vm2972_vm13, %v2970_v0  ;;  %v2641_v13 = vpack.c.bf16 %v1652_v12, %v1651_v11  ;;  %v1957_v11 = vld [vmem:[%s3340_s16] ss:$0 sm:$0xff] }
 0x385   :  { %2595 = vmatprep.subr.bf16.mxu0 %v2971_v51  ;;  %2170 = vmatprep.mubr.msk.f32.mxu1 %vm2972_vm13, %v2970_v0 }
 0x386   :  { %2621 = vmatpush3.bf16.msra.mxu1 %v2620_v45  ;;  %v1828_v45 = vld [vmem:[#allocation16 + $0x18] sm:$0xff] }
 0x387   :  { %2101 = vmatmul.mubr.msk.f32.vlgmr.msra.gmra.mrb[8].mxu0 %vm362_vm2, %v2724_v21  ;;  %2622 = vmatprep.subr.bf16.mxu1 %v2971_v51  ;;  %v1734_v21 = vld [vmem:[#allocation14 + $0x18] sm:$0xff]  ;;  %v2671_v46 = vpack.c.bf16 %v1828_v45, %v1827_v43 }
 0x388   :  { %2597 = vmatpush3.bf16.msra.mxu0 %v2596_v18  ;;  %2135 = vmatprep.mubr.msk.f32.mxu0 %vm2972_vm13, %v2970_v0 }
 0x389   :  { %2598 = vmatprep.subr.bf16.mxu0 %v2971_v51 }
 0x38a   :  { %2624 = vmatpush3.bf16.msra.mxu1 %v2623_v47  ;;  %v1829_v47 = vld [vmem:[#allocation16 + $0x20] sm:$0xff] }
 0x38b   :  { %2625 = vmatprep.subr.bf16.mxu1 %v2971_v51  ;;  %v2674_v49 = vpack.c.bf16 %v1830_v48, %v1829_v47 }
 0x38c   :  { %2600 = vmatpush3.bf16.msra.mxu0 %v2599_v22  ;;  %v2647_v22 = vpack.c.bf16 %v1734_v21, %v1733_v20 }
 0x38d   :  { %2601 = vmatprep.subr.bf16.mxu0 %v2971_v51 }
 0x38e   :  { %2627 = vmatpush3.bf16.msra.mxu1 %v2626_v50  ;;  %v1831_v50 = vld [vmem:[#allocation16 + $0x30] sm:$0xff] }
 0x38f   :  { %2628 = vmatprep.subr.bf16.mxu1 %v2971_v51  ;;  %v2677_v53 = vpack.c.bf16 %v1832_v52, %v1831_v50 }
 0x390   :  { %2603 = vmatpush3.bf16.msra.mxu0 %v2602_v25  ;;  %v2650_v25 = vpack.c.bf16 %v1736_v24, %v1735_v23 }
 0x391   :  { %2604 = vmatprep.subr.bf16.mxu0 %v2971_v51 }
 0x392   :  { %2630 = vmatpush3.bf16.msra.mxu1 %v2629_v32  ;;  %v1833_v32 = vld [vmem:[#allocation16 + $0x40] sm:$0xff] }
 0x393   :  { %2631 = vmatprep.subr.bf16.mxu1 %v2971_v51  ;;  %v2680_v55 = vpack.c.bf16 %v1834_v54, %v1833_v32 }
 0x394   :  { %2606 = vmatpush3.bf16.msra.mxu0 %v2605_v28  ;;  %v2653_v28 = vpack.c.bf16 %v1738_v27, %v1737_v26 }
 0x395   :  { %2607 = vmatprep.subr.bf16.mxu0 %v2971_v51 }
 0x396   :  { %2633 = vmatpush3.bf16.msra.mxu1 %v2632_v56  ;;  %v1835_v56 = vld [vmem:[#allocation16 + $0x50] sm:$0xff] }
 0x397   :  { %2634 = vmatprep.subr.bf16.mxu1 %v2971_v51  ;;  %v2683_v58 = vpack.c.bf16 %v1836_v57, %v1835_v56 }
 0x398   :  { %2609 = vmatpush3.bf16.msra.mxu0 %v2608_v31  ;;  %v2656_v31 = vpack.c.bf16 %v1740_v30, %v1739_v29 }
 0x399   :  { %2610 = vmatprep.subr.bf16.mxu0 %v2971_v51 }
 0x39a   :  { %2636 = vmatpush3.bf16.msra.mxu1 %v2635_v59  ;;  %v1837_v59 = vld [vmem:[#allocation16 + $0x60] sm:$0xff] }
 0x39b   :  { %2637 = vmatprep.subr.bf16.mxu1 %v2971_v51  ;;  %v2686_v61 = vpack.c.bf16 %v1838_v60, %v1837_v59 }
 0x39c   :  { %2612 = vmatpush3.bf16.msra.mxu0 %v2611_v35  ;;  %v1743_v35 = vld [vmem:[#allocation14 + $0x60] sm:$0xff] }
 0x39d   :  { %2613 = vmatprep.subr.bf16.mxu0 %v2971_v51  ;;  %v2662_v37 = vpack.c.bf16 %v1744_v36, %v1743_v35 }
 0x39e   :  { %2639 = vmatpush3.bf16.msra.mxu1 %v2638_v62  ;;  %v1955_v62 = vld [vmem:[%s3336_s12] ss:$0 sm:$0xff] }
 0x39f   :  { %2640 = vmatprep.subr.bf16.mxu1 %v2971_v51 }
 0x3a0   :  { %2615 = vmatpush3.bf16.msra.mxu0 %v2614_v38  ;;  %v1745_v38 = vld [vmem:[#allocation14 + $0x70] sm:$0xff] }
 0x3a1   :  { %2616 = vmatprep.subr.bf16.mxu0 %v2971_v51  ;;  %v2665_v40 = vpack.c.bf16 %v1746_v39, %v1745_v38 }
 0x3a2   :  { %2642 = vmatpush3.bf16.msra.mxu1 %v2641_v13 }
 0x3a3   :  { %2643 = vmatprep.subr.bf16.mxu1 %v2971_v51 }
 0x3a4   :  { %2618 = vmatpush3.bf16.msra.mxu0 %v2617_v41  ;;  %v1825_v41 = vld [vmem:[#allocation16] sm:$0xff] }
 0x3a5   :  { %2667 = vmatprep.subr.bf16.mxu0 %v2971_v51  ;;  %v2668_v44 = vpack.c.bf16 %v1826_v42, %v1825_v41 }
 0x456   :  { %v1990_v63 = vpop.f32.mrb[6].mxu0  ;;  %v2025_v1 = vpop.f32.mrb[6].mxu1 }
 0x457   :  { %v1991_v3 = vpop.f32.mrb[7].mxu0  ;;  %v2026_v4 = vpop.f32.mrb[7].mxu1 }
 0x458   :  { %v1992_v5 = vadd.f32 %v1991_v3, %v1990_v63  ;;  %v2027_v6 = vadd.f32 %v2026_v4, %v2025_v1  ;;  %v1839_v4 = vld [vmem:[#allocation16 + $0x70] sm:$0xff] }
 0x45a   :  { %v1400_v7 = vadd.f32 %v1992_v5, %v1952_v2  ;;  %v1840_v5 = vld [vmem:[#allocation16 + $0x78] sm:$0xff] }
 0x45c   :  { %v1470_v8 = vadd.f32 %v2027_v6, %v1400_v7  ;;  %v2689_v6 = vpack.c.bf16 %v1840_v5, %v1839_v4  ;;  %v1956_v7 = vld [vmem:[%s3338_s14] ss:$0 sm:$0xff] }
 0x45e   :  { %v1474_v9 = vmul.f32 0.3, %v1470_v8  ;;  %vm1473_vm14 = vcmp.ge.f32.partialorder %v1470_v8, 0.0 }
 0x460   :  { %v1475_v10 = vsel %vm1473_vm14, %v1470_v8, %v1474_v9 }
 0x461   :  { %2136 = vmatmul.mubr.f32.vlgmr.msra.gmra.mrb[8].mxu0 %v1475_v10 }
 0x462   :  { %2240 = vmatprep.mubr.msk.f32.mxu0 %vm2972_vm13, %v2970_v0  ;;  %2669 = vmatpush3.bf16.msra.mxu0 %v2668_v44 }
 0x463   :  { %2670 = vmatprep.subr.bf16.mxu0 %v2971_v51 }
 0x466   :  { %2672 = vmatpush3.bf16.msra.mxu0 %v2671_v46 }
 0x467   :  { %2673 = vmatprep.subr.bf16.mxu0 %v2971_v51 }
 0x46a   :  { %2675 = vmatpush3.bf16.msra.mxu0 %v2674_v49 }
 0x46b   :  { %2676 = vmatprep.subr.bf16.mxu0 %v2971_v51 }
 0x46e   :  { %2678 = vmatpush3.bf16.msra.mxu0 %v2677_v53 }
 0x46f   :  { %2679 = vmatprep.subr.bf16.mxu0 %v2971_v51 }
 0x472   :  { %2681 = vmatpush3.bf16.msra.mxu0 %v2680_v55 }
 0x473   :  { %2682 = vmatprep.subr.bf16.mxu0 %v2971_v51 }
 0x476   :  { %2684 = vmatpush3.bf16.msra.mxu0 %v2683_v58 }
 0x477   :  { %2685 = vmatprep.subr.bf16.mxu0 %v2971_v51 }
 0x47a   :  { %2687 = vmatpush3.bf16.msra.mxu0 %v2686_v61 }
 0x47b   :  { %2688 = vmatprep.subr.bf16.mxu0 %v2971_v51 }
 0x47e   :  { %2690 = vmatpush3.bf16.msra.mxu0 %v2689_v6 }
 0x534   :  { %v1632_v16 = vpop.f32.mrb[8].mxu0 }
 0x535   :  { %v1636_v18 = vmax.f32 %v1632_v16, 0.0  ;;  %v2137_v19 = vpop.f32.mrb[9].mxu0 }
 0x537   :  { %2171 = vmatmul.mubr.f32.vlgmr.msra.gmra.mrb[8].mxu1 %v1636_v18 }
 0x538   :  { %2645 = vmatpush3.bf16.msra.mxu1 %v2644_v17  ;;  %2205 = vmatprep.mubr.msk.f32.mxu1 %vm2972_vm13, %v2970_v0  ;;  %v1741_v0 = vld [vmem:[#allocation14 + $0x50] sm:$0xff] }
 0x539   :  { %2646 = vmatprep.subr.bf16.mxu1 %v2971_v51  ;;  %v2659_v34 = vpack.c.bf16 %v1742_v33, %v1741_v0 }
 0x53c   :  { %2648 = vmatpush3.bf16.msra.mxu1 %v2647_v22 }
 0x53d   :  { %2649 = vmatprep.subr.bf16.mxu1 %v2971_v51 }
 0x540   :  { %2651 = vmatpush3.bf16.msra.mxu1 %v2650_v25 }
 0x541   :  { %2652 = vmatprep.subr.bf16.mxu1 %v2971_v51 }
 0x544   :  { %2654 = vmatpush3.bf16.msra.mxu1 %v2653_v28 }
 0x545   :  { %2655 = vmatprep.subr.bf16.mxu1 %v2971_v51 }
 0x548   :  { %2657 = vmatpush3.bf16.msra.mxu1 %v2656_v31 }
 0x549   :  { %2658 = vmatprep.subr.bf16.mxu1 %v2971_v51 }
 0x54c   :  { %2660 = vmatpush3.bf16.msra.mxu1 %v2659_v34 }
 0x54d   :  { %2661 = vmatprep.subr.bf16.mxu1 %v2971_v51 }
 0x550   :  { %2663 = vmatpush3.bf16.msra.mxu1 %v2662_v37 }
 0x551   :  { %2664 = vmatprep.subr.bf16.mxu1 %v2971_v51 }
 0x554   :  { %2666 = vmatpush3.bf16.msra.mxu1 %v2665_v40 }
 0x60a   :  { %v1726_v63 = vpop.f32.mrb[8].mxu1 }
 0x60b   :  { %v1727_v1 = vadd.f32 %v1955_v62, %v1726_v63  ;;  %v2172_v2 = vpop.f32.mrb[9].mxu1 }
 0x60d   :  { %v1730_v3 = vmax.f32 %v1727_v1, 0.0 }
 0x60f   :  { %2206 = vmatmul.mubr.f32.vlgmr.msra.gmra.mrb[10].mxu1 %v1730_v3 }
 0x6e2   :  { %v1820_v8 = vpop.f32.mrb[10].mxu1 }
 0x6e3   :  { %v1821_v9 = vadd.f32 %v1956_v7, %v1820_v8  ;;  %v2207_v51 = vpop.f32.mrb[11].mxu1 }
 0x6e5   :  { %v1824_v10 = vmax.f32 %v1821_v9, 0.0 }
 0x6e7   :  { %2241 = vmatmul.mubr.f32.vlgmr.msra.gmra.mrb[10].mxu0 %v1824_v10 }
 0x7ba   :  { %v1914_v12 = vpop.f32.mrb[10].mxu0 }
 0x7bb   :  { %v1915_v13 = vadd.f32 %v1957_v11, %v1914_v12  ;;  %v2242_v14 = vpop.f32.mrb[11].mxu0 }
 0x7bd   :  { %1918 = vst [vmem:[#allocation17] sm:$0xff] %v1915_v13 }
 0x7be   :  { %2934 = shalt.err (!%p2931_p6)
}
 0x7bf   :  { %s2935_s11 = scalar_lea.hbm %s3341_s17, 128 }
 0x7c0   :  { %p2936_p7 = scmp.ne.s32.totalorder %s3341_s17, %s2935_s11  ;;  %p2939_p8 = scmp.lt.u32.totalorder %s2935_s11, %s3341_s17 }
 0x7c2   :  { %p2941_p9 = pnand %p2939_p8, %p2936_p7 }
 0x7c4   :  { %2944 = shalt.err (!%p2941_p9)
}
 0x7c5   :  { %1928 = dma.vmem_to_hbm [thread:$0]  %s1926_s27, 128, %s3341_s17, [#allocation4]  }
 0x7c6   :  { %2955 = dma.done.wait [#allocation4], 128  }
 0x7c7   :  { %2956 = vsyncadd [#allocation4], 4294967168 }
 0x7c8   :  { %1932 = vsyncpa [#allocation3], 1 }
 0x7c9   :  { %1933 = vsyncpa [#allocation6], 1 }
 0x7ca   :  { %1934 = vsyncpa [#allocation9], 1 }
 0x7cb   :  { %1935 = vsyncpa [#allocation12], 1 }
 0x7cc   :  { %1936 = vsyncpa [#allocation15], 1 }
 0x7cd   :  { %1937 = vsyncpa [#allocation4], 1 }

</bundles_post_ra>
